<compile_context>
chip_gen: v7x
topology: tpu7x:2x2x1
jax: 0.10.0
libtpu: 0.0.40
codegen_flags: <defaults>
</compile_context>

<pallas_src>
import functools

import jax
import jax.numpy as jnp
from jax.experimental import pallas as pl
from jax.experimental.pallas import tpu as pltpu


# -----------------------------------------------------------------------------
# Fused kernel: ReLU + depthwise dilated conv + 1x1 conv + BatchNorm (training)
# -----------------------------------------------------------------------------
def _make_dilconv_kernel(kh, kw, dil, stride, pad, h, w, h_out, w_out,
                         c_in, tco, n_batch, eps):
    inv_cnt = 1.0 / float(n_batch * h_out * w_out)

    def kernel(x_ref, wdw_ref, wpw_ref, gamma_ref, beta_ref, o_ref,
               xp_ref, y_scr):
        # x_ref:     (1, C_in, H, W)       one batch element (NCHW)
        # wdw_ref:   (KH*KW, C_in)         depthwise weights in SMEM (scalars)
        # wpw_ref:   (TCO, 1, C_in)        pointwise weights for this co-block
        # gamma_ref: (TCO, 1), beta_ref: (TCO, 1)
        # o_ref:     (N, TCO, M)           lane-dense, VMEM-resident over batch
        # xp_ref:    (C_in, Hp, Wp)        scratch: zero-padded ReLU(x)
        # y_scr:     (TCO, H_out, W_out)   scratch for the lane-dense repack
        n = pl.program_id(1)

        @pl.when(n == 0)
        def _init():
            # Zero once per co-block sweep: the halo stays zero afterwards,
            # only the interior is (re)written each batch step.
            xp_ref[...] = jnp.zeros_like(xp_ref)

        # ReLU + zero-pad: ReLU(0) == 0, so padding after ReLU is equivalent.
        xp_ref[:, pad:pad + h, pad:pad + w] = jnp.maximum(
            x_ref[0].astype(jnp.float32), 0.0)

        # Depthwise dilated conv + 1x1 pointwise conv, fused per input channel.
        # TODO(synk): realize tap offsets with pltpu.roll (XLU) + halo-tile H
        #             rows for large spatial sizes; route the 1x1 conv to the
        #             MXU (jnp.dot, lane-dense acc) once C_in/C_out reach ~32+.
        y3 = jnp.zeros((tco, h_out, w_out), jnp.float32)
        for ci in range(c_in):
            acc = jnp.zeros((h_out, w_out), jnp.float32)
            for i in range(kh):
                hs = i * dil
                for j in range(kw):
                    ws = j * dil
                    if stride == 1:
                        win = xp_ref[ci, hs:hs + h_out, ws:ws + w_out]
                    else:
                        # TODO(synk): stride>1 path is untested by this script.
                        win = xp_ref[ci, pl.ds(hs, h_out, stride),
                                     pl.ds(ws, w_out, stride)]
                    acc = acc + win * wdw_ref[i * kw + j, ci]   # SMEM splat
            col = wpw_ref[:, :, ci:ci + 1]                      # (TCO, 1, 1)
            y3 = y3 + col * acc[None, :, :]                     # VPU outer FMA

        # Repack (TCO, H_out, W_out) -> lane-dense rows of the resident output
        # block (VMEM-only stores; the HBM writeback at the end is full-width).
        y_scr[...] = y3
        for r in range(h_out):
            o_ref[n, :, r * w_out:(r + 1) * w_out] = y_scr[:, r, :]

        # Last batch step: whole pre-BN batch is resident in o_ref -> compute
        # batch stats, fold into scale/shift, apply affine in place.
        @pl.when(n == n_batch - 1)
        def _bn():
            yall = o_ref[...]                                   # (N, TCO, M)
            s1 = jnp.sum(jnp.sum(yall, axis=2, keepdims=True), axis=0)
            s2 = jnp.sum(jnp.sum(yall * yall, axis=2, keepdims=True), axis=0)
            mean = s1 * inv_cnt                                 # (TCO, 1)
            var = s2 * inv_cnt - mean * mean                    # biased
            scale = gamma_ref[...] * jax.lax.rsqrt(var + eps)
            shift = beta_ref[...] - mean * scale
            o_ref[...] = yall * scale[None, :, :] + shift[None, :, :]

    return kernel


def _pick_cout_tile(c_out):
    # Keep >= 2 channel blocks for v7x's two TensorCores when the half still
    # satisfies the 8-sublane BlockSpec rule; otherwise one block.
    if c_out % 16 == 0:
        return c_out // 2
    return c_out


# -----------------------------------------------------------------------------
# Wrapper
# -----------------------------------------------------------------------------
def dilconv_forward(x_nchw, w_dw, w_pw, gamma, beta, *, stride, padding,
                    dilation, eps=1e-3):
    """
    x_nchw : (N, C_in, H, W)
    w_dw   : (C_in, 1, KH, KW)   depthwise weights (PyTorch OIHW, groups=C_in)
    w_pw   : (C_out, C_in, 1, 1) pointwise weights
    gamma, beta : (C_out,)
    returns (N, C_out, Hout, Wout)
    """
    N, C_in, H, W = x_nchw.shape
    C_out = w_pw.shape[0]
    KH, KW = w_dw.shape[2], w_dw.shape[3]
    H_out = (H + 2 * padding - dilation * (KH - 1) - 1) // stride + 1
    W_out = (W + 2 * padding - dilation * (KW - 1) - 1) // stride + 1
    M = H_out * W_out
    Hp, Wp = H + 2 * padding, W + 2 * padding
    TCO = _pick_cout_tile(C_out)
    co_blocks = C_out // TCO

    # TODO(synk): add the two-pass fallback (per-batch stats kernel + BN-apply
    # kernel) when the resident pre-BN block no longer fits the VMEM budget.
    if 4 * N * C_out * M > 16 * 1024 * 1024:
        raise NotImplementedError(
            "whole-batch-resident DilConv needs the two-pass BN fallback")

    # Tiny weight re-layouts (host side, O(C_in*C_out + KH*KW*C_in) elements).
    wdw = jnp.transpose(w_dw[:, 0, :, :], (1, 2, 0))            # (KH, KW, C_in)
    wdw = wdw.reshape(KH * KW, C_in).astype(jnp.float32)        # SMEM table
    wpw = w_pw[:, :, 0, 0].astype(jnp.float32)[:, None, :]      # (C_out,1,C_in)
    gamma2 = gamma.astype(jnp.float32).reshape(C_out, 1)
    beta2 = beta.astype(jnp.float32).reshape(C_out, 1)

    kernel = _make_dilconv_kernel(KH, KW, dilation, stride, padding, H, W,
                                  H_out, W_out, C_in, TCO, N, eps)

    out_flat = pl.pallas_call(
        kernel,
        out_shape=jax.ShapeDtypeStruct((N, C_out, M), jnp.float32),
        grid_spec=pltpu.PrefetchScalarGridSpec(
            num_scalar_prefetch=0,
            grid=(co_blocks, N),
            in_specs=[
                pl.BlockSpec((1, C_in, H, W), lambda cb, n: (n, 0, 0, 0)),
                pl.BlockSpec(memory_space=pltpu.MemorySpace.SMEM),
                pl.BlockSpec((TCO, 1, C_in), lambda cb, n: (cb, 0, 0)),
                pl.BlockSpec((TCO, 1), lambda cb, n: (cb, 0)),
                pl.BlockSpec((TCO, 1), lambda cb, n: (cb, 0)),
            ],
            out_specs=pl.BlockSpec((N, TCO, M), lambda cb, n: (0, cb, 0)),
            scratch_shapes=[
                pltpu.VMEM((C_in, Hp, Wp), jnp.float32),
                pltpu.VMEM((TCO, H_out, W_out), jnp.float32),
            ],
        ),
        compiler_params=pltpu.CompilerParams(
            dimension_semantics=("parallel", "arbitrary")),
    )(x_nchw, wdw, wpw, gamma2, beta2)

    # Trailing-dim split only -> free.
    return out_flat.reshape(N, C_out, H_out, W_out)


# -----------------------------------------------------------------------------
# Pure-JAX reference (for validation)
# -----------------------------------------------------------------------------
def dilconv_reference(x, w_dw, w_pw, gamma, beta, *, stride, padding, dilation,
                      eps=1e-3):
    xr = jax.nn.relu(x)
    C_in = x.shape[1]
    dw = jax.lax.conv_general_dilated(
        xr, w_dw, window_strides=(stride, stride),
        padding=[(padding, padding), (padding, padding)],
        rhs_dilation=(dilation, dilation),
        dimension_numbers=("NCHW", "OIHW", "NCHW"),
        feature_group_count=C_in)
    pw = jax.lax.conv_general_dilated(
        dw, w_pw, window_strides=(1, 1), padding="VALID",
        dimension_numbers=("NCHW", "OIHW", "NCHW"))
    mean = jnp.mean(pw, axis=(0, 2, 3), keepdims=True)
    var = jnp.mean((pw - mean) ** 2, axis=(0, 2, 3), keepdims=True)
    return (pw - mean) * jax.lax.rsqrt(var + eps) * gamma[None, :, None, None] \
        + beta[None, :, None, None]


if __name__ == "__main__":
    # DilConv(C_in=4, C_out=8, kernel_size=3, stride=1, padding=2, dilation=2)
    N, C_in, H, W = 2, 4, 16, 16
    C_out, K, STRIDE, PAD, DIL = 8, 3, 1, 2, 2

    key = jax.random.PRNGKey(0)
    k1, k2, k3 = jax.random.split(key, 3)
    x = jax.random.normal(k1, (N, C_in, H, W), jnp.float32)
    w_dw = jax.random.normal(k2, (C_in, 1, K, K), jnp.float32) * 0.2
    w_pw = jax.random.normal(k3, (C_out, C_in, 1, 1), jnp.float32) * 0.2
    gamma = jnp.ones((C_out,), jnp.float32)     # BN affine init (PyTorch default)
    beta = jnp.zeros((C_out,), jnp.float32)

    fwd = functools.partial(dilconv_forward, stride=STRIDE, padding=PAD,
                            dilation=DIL, eps=1e-3)
    out = jax.jit(fwd)(x, w_dw, w_pw, gamma, beta)
    out = jax.block_until_ready(out)

    ref = dilconv_reference(x, w_dw, w_pw, gamma, beta,
                            stride=STRIDE, padding=PAD, dilation=DIL, eps=1e-3)
    assert out.shape == ref.shape == (N, C_out, H, W)
    assert jnp.allclose(out, ref, atol=1e-4, rtol=1e-4), \
        float(jnp.max(jnp.abs(out - ref)))

    print("KERNEL_OK")
</pallas_src>

<mosaic_0001>
module attributes {stable_mosaic.version = 11 : i64} {
  func.func @kernel(%arg0: i32, %arg1: i32, %arg2: memref<1x4x16x16xf32, #tpu.memory_space<vmem>>, %arg3: memref<9x4xf32, #tpu.memory_space<smem>>, %arg4: memref<8x1x4xf32, #tpu.memory_space<vmem>>, %arg5: memref<8x1xf32, #tpu.memory_space<vmem>>, %arg6: memref<8x1xf32, #tpu.memory_space<vmem>>, %arg7: memref<2x8x256xf32, #tpu.memory_space<vmem>>, %arg8: memref<4x20x20xf32, #tpu.memory_space<vmem>>, %arg9: memref<8x16x16xf32, #tpu.memory_space<vmem>>) attributes {dimension_semantics = [#tpu.dimension_semantics<parallel>, #tpu.dimension_semantics<arbitrary>], iteration_bounds = array<i64: 1, 2>, scalar_prefetch = 0 : i64, scratch_operands = 2 : i64, tpu.core_type = #tpu.core_type<tc>, window_params = [{transform_indices = @transform_0, window_bounds = array<i64: 1, 4, 16, 16>}, {transform_indices = @transform_1, window_bounds = array<i64: 9, 4>}, {transform_indices = @transform_2, window_bounds = array<i64: 8, 1, 4>}, {transform_indices = @transform_3, window_bounds = array<i64: 8, 1>}, {transform_indices = @transform_4, window_bounds = array<i64: 8, 1>}, {transform_indices = @transform_5, window_bounds = array<i64: 2, 8, 256>}]} {
    %c0_i32 = arith.constant 0 : i32
    %0 = arith.cmpi eq, %arg1, %c0_i32 : i32
    %1 = arith.extui %0 : i1 to i32
    %c0_i32_0 = arith.constant 0 : i32
    %2 = arith.cmpi ne, %1, %c0_i32_0 : i32
    scf.if %2 {
      %cst_258 = arith.constant 0.000000e+00 : f32
      %353 = vector.broadcast %cst_258 : f32 to vector<4x20x20xf32>
      %c0_259 = arith.constant 0 : index
      %c0_260 = arith.constant 0 : index
      %c0_261 = arith.constant 0 : index
      %354 = vector.load %arg8[%c0_259, %c0_260, %c0_261] : memref<4x20x20xf32, #tpu.memory_space<vmem>>, vector<4x20x20xf32>
      tpu.vector_store %arg8[%c0_259, %c0_260, %c0_261], %353 {strides = array<i32>} : memref<4x20x20xf32, #tpu.memory_space<vmem>>, vector<4x20x20xf32>,
    } else {
    }
    %c0 = arith.constant 0 : index
    %c0_1 = arith.constant 0 : index
    %c0_2 = arith.constant 0 : index
    %c0_3 = arith.constant 0 : index
    %3 = vector.load %arg2[%c0, %c0_1, %c0_2, %c0_3] : memref<1x4x16x16xf32, #tpu.memory_space<vmem>>, vector<1x4x16x16xf32>
    %4 = vector.shape_cast %3 : vector<1x4x16x16xf32> to vector<4x16x16xf32>
    %cst = arith.constant 0.000000e+00 : f32
    %5 = vector.broadcast %cst : f32 to vector<4x16x16xf32>
    %6 = arith.maximumf %4, %5 : vector<4x16x16xf32>
    %c0_4 = arith.constant 0 : index
    %c2 = arith.constant 2 : index
    %c2_5 = arith.constant 2 : index
    %7 = vector.load %arg8[%c0_4, %c2, %c2_5] : memref<4x20x20xf32, #tpu.memory_space<vmem>>, vector<4x16x16xf32>
    tpu.vector_store %arg8[%c0_4, %c2, %c2_5], %6 {strides = array<i32>} : memref<4x20x20xf32, #tpu.memory_space<vmem>>, vector<4x16x16xf32>,
    %cst_6 = arith.constant 0.000000e+00 : f32
    %8 = vector.broadcast %cst_6 : f32 to vector<8x16x16xf32>
    %cst_7 = arith.constant 0.000000e+00 : f32
    %9 = vector.broadcast %cst_7 : f32 to vector<16x16xf32>
    %c0_8 = arith.constant 0 : index
    %c0_9 = arith.constant 0 : index
    %c0_10 = arith.constant 0 : index
    %10 = vector.load %arg8[%c0_8, %c0_9, %c0_10] : memref<4x20x20xf32, #tpu.memory_space<vmem>>, vector<1x16x16xf32>
    %11 = vector.shape_cast %10 : vector<1x16x16xf32> to vector<16x16xf32>
    %c0_11 = arith.constant 0 : index
    %c0_12 = arith.constant 0 : index
    %12 = memref.load %arg3[%c0_11, %c0_12] : memref<9x4xf32, #tpu.memory_space<smem>>
    %13 = vector.broadcast %12 : f32 to vector<16x16xf32>
    %14 = arith.mulf %11, %13 : vector<16x16xf32>
    %15 = arith.addf %9, %14 : vector<16x16xf32>
    %c0_13 = arith.constant 0 : index
    %c0_14 = arith.constant 0 : index
    %c2_15 = arith.constant 2 : index
    %16 = vector.load %arg8[%c0_13, %c0_14, %c2_15] : memref<4x20x20xf32, #tpu.memory_space<vmem>>, vector<1x16x16xf32>
    %17 = vector.shape_cast %16 : vector<1x16x16xf32> to vector<16x16xf32>
    %c1 = arith.constant 1 : index
    %c0_16 = arith.constant 0 : index
    %18 = memref.load %arg3[%c1, %c0_16] : memref<9x4xf32, #tpu.memory_space<smem>>
    %19 = vector.broadcast %18 : f32 to vector<16x16xf32>
    %20 = arith.mulf %17, %19 : vector<16x16xf32>
    %21 = arith.addf %15, %20 : vector<16x16xf32>
    %c0_17 = arith.constant 0 : index
    %c0_18 = arith.constant 0 : index
    %c4 = arith.constant 4 : index
    %22 = vector.load %arg8[%c0_17, %c0_18, %c4] : memref<4x20x20xf32, #tpu.memory_space<vmem>>, vector<1x16x16xf32>
    %23 = vector.shape_cast %22 : vector<1x16x16xf32> to vector<16x16xf32>
    %c2_19 = arith.constant 2 : index
    %c0_20 = arith.constant 0 : index
    %24 = memref.load %arg3[%c2_19, %c0_20] : memref<9x4xf32, #tpu.memory_space<smem>>
    %25 = vector.broadcast %24 : f32 to vector<16x16xf32>
    %26 = arith.mulf %23, %25 : vector<16x16xf32>
    %27 = arith.addf %21, %26 : vector<16x16xf32>
    %c0_21 = arith.constant 0 : index
    %c2_22 = arith.constant 2 : index
    %c0_23 = arith.constant 0 : index
    %28 = vector.load %arg8[%c0_21, %c2_22, %c0_23] : memref<4x20x20xf32, #tpu.memory_space<vmem>>, vector<1x16x16xf32>
    %29 = vector.shape_cast %28 : vector<1x16x16xf32> to vector<16x16xf32>
    %c3 = arith.constant 3 : index
    %c0_24 = arith.constant 0 : index
    %30 = memref.load %arg3[%c3, %c0_24] : memref<9x4xf32, #tpu.memory_space<smem>>
    %31 = vector.broadcast %30 : f32 to vector<16x16xf32>
    %32 = arith.mulf %29, %31 : vector<16x16xf32>
    %33 = arith.addf %27, %32 : vector<16x16xf32>
    %c0_25 = arith.constant 0 : index
    %c2_26 = arith.constant 2 : index
    %c2_27 = arith.constant 2 : index
    %34 = vector.load %arg8[%c0_25, %c2_26, %c2_27] : memref<4x20x20xf32, #tpu.memory_space<vmem>>, vector<1x16x16xf32>
    %35 = vector.shape_cast %34 : vector<1x16x16xf32> to vector<16x16xf32>
    %c4_28 = arith.constant 4 : index
    %c0_29 = arith.constant 0 : index
    %36 = memref.load %arg3[%c4_28, %c0_29] : memref<9x4xf32, #tpu.memory_space<smem>>
    %37 = vector.broadcast %36 : f32 to vector<16x16xf32>
    %38 = arith.mulf %35, %37 : vector<16x16xf32>
    %39 = arith.addf %33, %38 : vector<16x16xf32>
    %c0_30 = arith.constant 0 : index
    %c2_31 = arith.constant 2 : index
    %c4_32 = arith.constant 4 : index
    %40 = vector.load %arg8[%c0_30, %c2_31, %c4_32] : memref<4x20x20xf32, #tpu.memory_space<vmem>>, vector<1x16x16xf32>
    %41 = vector.shape_cast %40 : vector<1x16x16xf32> to vector<16x16xf32>
    %c5 = arith.constant 5 : index
    %c0_33 = arith.constant 0 : index
    %42 = memref.load %arg3[%c5, %c0_33] : memref<9x4xf32, #tpu.memory_space<smem>>
    %43 = vector.broadcast %42 : f32 to vector<16x16xf32>
    %44 = arith.mulf %41, %43 : vector<16x16xf32>
    %45 = arith.addf %39, %44 : vector<16x16xf32>
    %c0_34 = arith.constant 0 : index
    %c4_35 = arith.constant 4 : index
    %c0_36 = arith.constant 0 : index
    %46 = vector.load %arg8[%c0_34, %c4_35, %c0_36] : memref<4x20x20xf32, #tpu.memory_space<vmem>>, vector<1x16x16xf32>
    %47 = vector.shape_cast %46 : vector<1x16x16xf32> to vector<16x16xf32>
    %c6 = arith.constant 6 : index
    %c0_37 = arith.constant 0 : index
    %48 = memref.load %arg3[%c6, %c0_37] : memref<9x4xf32, #tpu.memory_space<smem>>
    %49 = vector.broadcast %48 : f32 to vector<16x16xf32>
    %50 = arith.mulf %47, %49 : vector<16x16xf32>
    %51 = arith.addf %45, %50 : vector<16x16xf32>
    %c0_38 = arith.constant 0 : index
    %c4_39 = arith.constant 4 : index
    %c2_40 = arith.constant 2 : index
    %52 = vector.load %arg8[%c0_38, %c4_39, %c2_40] : memref<4x20x20xf32, #tpu.memory_space<vmem>>, vector<1x16x16xf32>
    %53 = vector.shape_cast %52 : vector<1x16x16xf32> to vector<16x16xf32>
    %c7 = arith.constant 7 : index
    %c0_41 = arith.constant 0 : index
    %54 = memref.load %arg3[%c7, %c0_41] : memref<9x4xf32, #tpu.memory_space<smem>>
    %55 = vector.broadcast %54 : f32 to vector<16x16xf32>
    %56 = arith.mulf %53, %55 : vector<16x16xf32>
    %57 = arith.addf %51, %56 : vector<16x16xf32>
    %c0_42 = arith.constant 0 : index
    %c4_43 = arith.constant 4 : index
    %c4_44 = arith.constant 4 : index
    %58 = vector.load %arg8[%c0_42, %c4_43, %c4_44] : memref<4x20x20xf32, #tpu.memory_space<vmem>>, vector<1x16x16xf32>
    %59 = vector.shape_cast %58 : vector<1x16x16xf32> to vector<16x16xf32>
    %c8 = arith.constant 8 : index
    %c0_45 = arith.constant 0 : index
    %60 = memref.load %arg3[%c8, %c0_45] : memref<9x4xf32, #tpu.memory_space<smem>>
    %61 = vector.broadcast %60 : f32 to vector<16x16xf32>
    %62 = arith.mulf %59, %61 : vector<16x16xf32>
    %63 = arith.addf %57, %62 : vector<16x16xf32>
    %c0_46 = arith.constant 0 : index
    %c0_47 = arith.constant 0 : index
    %c0_48 = arith.constant 0 : index
    %64 = vector.load %arg4[%c0_46, %c0_47, %c0_48] : memref<8x1x4xf32, #tpu.memory_space<vmem>>, vector<8x1x1xf32>
    %65 = vector.shape_cast %63 : vector<16x16xf32> to vector<1x16x16xf32>
    %66 = vector.broadcast %64 : vector<8x1x1xf32> to vector<8x16x16xf32>
    %67 = vector.broadcast %65 : vector<1x16x16xf32> to vector<8x16x16xf32>
    %68 = arith.mulf %66, %67 : vector<8x16x16xf32>
    %69 = arith.addf %8, %68 : vector<8x16x16xf32>
    %cst_49 = arith.constant 0.000000e+00 : f32
    %70 = vector.broadcast %cst_49 : f32 to vector<16x16xf32>
    %c1_50 = arith.constant 1 : index
    %c0_51 = arith.constant 0 : index
    %c0_52 = arith.constant 0 : index
    %71 = vector.load %arg8[%c1_50, %c0_51, %c0_52] : memref<4x20x20xf32, #tpu.memory_space<vmem>>, vector<1x16x16xf32>
    %72 = vector.shape_cast %71 : vector<1x16x16xf32> to vector<16x16xf32>
    %c0_53 = arith.constant 0 : index
    %c1_54 = arith.constant 1 : index
    %73 = memref.load %arg3[%c0_53, %c1_54] : memref<9x4xf32, #tpu.memory_space<smem>>
    %74 = vector.broadcast %73 : f32 to vector<16x16xf32>
    %75 = arith.mulf %72, %74 : vector<16x16xf32>
    %76 = arith.addf %70, %75 : vector<16x16xf32>
    %c1_55 = arith.constant 1 : index
    %c0_56 = arith.constant 0 : index
    %c2_57 = arith.constant 2 : index
    %77 = vector.load %arg8[%c1_55, %c0_56, %c2_57] : memref<4x20x20xf32, #tpu.memory_space<vmem>>, vector<1x16x16xf32>
    %78 = vector.shape_cast %77 : vector<1x16x16xf32> to vector<16x16xf32>
    %c1_58 = arith.constant 1 : index
    %c1_59 = arith.constant 1 : index
    %79 = memref.load %arg3[%c1_58, %c1_59] : memref<9x4xf32, #tpu.memory_space<smem>>
    %80 = vector.broadcast %79 : f32 to vector<16x16xf32>
    %81 = arith.mulf %78, %80 : vector<16x16xf32>
    %82 = arith.addf %76, %81 : vector<16x16xf32>
    %c1_60 = arith.constant 1 : index
    %c0_61 = arith.constant 0 : index
    %c4_62 = arith.constant 4 : index
    %83 = vector.load %arg8[%c1_60, %c0_61, %c4_62] : memref<4x20x20xf32, #tpu.memory_space<vmem>>, vector<1x16x16xf32>
    %84 = vector.shape_cast %83 : vector<1x16x16xf32> to vector<16x16xf32>
    %c2_63 = arith.constant 2 : index
    %c1_64 = arith.constant 1 : index
    %85 = memref.load %arg3[%c2_63, %c1_64] : memref<9x4xf32, #tpu.memory_space<smem>>
    %86 = vector.broadcast %85 : f32 to vector<16x16xf32>
    %87 = arith.mulf %84, %86 : vector<16x16xf32>
    %88 = arith.addf %82, %87 : vector<16x16xf32>
    %c1_65 = arith.constant 1 : index
    %c2_66 = arith.constant 2 : index
    %c0_67 = arith.constant 0 : index
    %89 = vector.load %arg8[%c1_65, %c2_66, %c0_67] : memref<4x20x20xf32, #tpu.memory_space<vmem>>, vector<1x16x16xf32>
    %90 = vector.shape_cast %89 : vector<1x16x16xf32> to vector<16x16xf32>
    %c3_68 = arith.constant 3 : index
    %c1_69 = arith.constant 1 : index
    %91 = memref.load %arg3[%c3_68, %c1_69] : memref<9x4xf32, #tpu.memory_space<smem>>
    %92 = vector.broadcast %91 : f32 to vector<16x16xf32>
    %93 = arith.mulf %90, %92 : vector<16x16xf32>
    %94 = arith.addf %88, %93 : vector<16x16xf32>
    %c1_70 = arith.constant 1 : index
    %c2_71 = arith.constant 2 : index
    %c2_72 = arith.constant 2 : index
    %95 = vector.load %arg8[%c1_70, %c2_71, %c2_72] : memref<4x20x20xf32, #tpu.memory_space<vmem>>, vector<1x16x16xf32>
    %96 = vector.shape_cast %95 : vector<1x16x16xf32> to vector<16x16xf32>
    %c4_73 = arith.constant 4 : index
    %c1_74 = arith.constant 1 : index
    %97 = memref.load %arg3[%c4_73, %c1_74] : memref<9x4xf32, #tpu.memory_space<smem>>
    %98 = vector.broadcast %97 : f32 to vector<16x16xf32>
    %99 = arith.mulf %96, %98 : vector<16x16xf32>
    %100 = arith.addf %94, %99 : vector<16x16xf32>
    %c1_75 = arith.constant 1 : index
    %c2_76 = arith.constant 2 : index
    %c4_77 = arith.constant 4 : index
    %101 = vector.load %arg8[%c1_75, %c2_76, %c4_77] : memref<4x20x20xf32, #tpu.memory_space<vmem>>, vector<1x16x16xf32>
    %102 = vector.shape_cast %101 : vector<1x16x16xf32> to vector<16x16xf32>
    %c5_78 = arith.constant 5 : index
    %c1_79 = arith.constant 1 : index
    %103 = memref.load %arg3[%c5_78, %c1_79] : memref<9x4xf32, #tpu.memory_space<smem>>
    %104 = vector.broadcast %103 : f32 to vector<16x16xf32>
    %105 = arith.mulf %102, %104 : vector<16x16xf32>
    %106 = arith.addf %100, %105 : vector<16x16xf32>
    %c1_80 = arith.constant 1 : index
    %c4_81 = arith.constant 4 : index
    %c0_82 = arith.constant 0 : index
    %107 = vector.load %arg8[%c1_80, %c4_81, %c0_82] : memref<4x20x20xf32, #tpu.memory_space<vmem>>, vector<1x16x16xf32>
    %108 = vector.shape_cast %107 : vector<1x16x16xf32> to vector<16x16xf32>
    %c6_83 = arith.constant 6 : index
    %c1_84 = arith.constant 1 : index
    %109 = memref.load %arg3[%c6_83, %c1_84] : memref<9x4xf32, #tpu.memory_space<smem>>
    %110 = vector.broadcast %109 : f32 to vector<16x16xf32>
    %111 = arith.mulf %108, %110 : vector<16x16xf32>
    %112 = arith.addf %106, %111 : vector<16x16xf32>
    %c1_85 = arith.constant 1 : index
    %c4_86 = arith.constant 4 : index
    %c2_87 = arith.constant 2 : index
    %113 = vector.load %arg8[%c1_85, %c4_86, %c2_87] : memref<4x20x20xf32, #tpu.memory_space<vmem>>, vector<1x16x16xf32>
    %114 = vector.shape_cast %113 : vector<1x16x16xf32> to vector<16x16xf32>
    %c7_88 = arith.constant 7 : index
    %c1_89 = arith.constant 1 : index
    %115 = memref.load %arg3[%c7_88, %c1_89] : memref<9x4xf32, #tpu.memory_space<smem>>
    %116 = vector.broadcast %115 : f32 to vector<16x16xf32>
    %117 = arith.mulf %114, %116 : vector<16x16xf32>
    %118 = arith.addf %112, %117 : vector<16x16xf32>
    %c1_90 = arith.constant 1 : index
    %c4_91 = arith.constant 4 : index
    %c4_92 = arith.constant 4 : index
    %119 = vector.load %arg8[%c1_90, %c4_91, %c4_92] : memref<4x20x20xf32, #tpu.memory_space<vmem>>, vector<1x16x16xf32>
    %120 = vector.shape_cast %119 : vector<1x16x16xf32> to vector<16x16xf32>
    %c8_93 = arith.constant 8 : index
    %c1_94 = arith.constant 1 : index
    %121 = memref.load %arg3[%c8_93, %c1_94] : memref<9x4xf32, #tpu.memory_space<smem>>
    %122 = vector.broadcast %121 : f32 to vector<16x16xf32>
    %123 = arith.mulf %120, %122 : vector<16x16xf32>
    %124 = arith.addf %118, %123 : vector<16x16xf32>
    %c0_95 = arith.constant 0 : index
    %c0_96 = arith.constant 0 : index
    %c1_97 = arith.constant 1 : index
    %125 = vector.load %arg4[%c0_95, %c0_96, %c1_97] : memref<8x1x4xf32, #tpu.memory_space<vmem>>, vector<8x1x1xf32>
    %126 = vector.shape_cast %124 : vector<16x16xf32> to vector<1x16x16xf32>
    %127 = vector.broadcast %125 : vector<8x1x1xf32> to vector<8x16x16xf32>
    %128 = vector.broadcast %126 : vector<1x16x16xf32> to vector<8x16x16xf32>
    %129 = arith.mulf %127, %128 : vector<8x16x16xf32>
    %130 = arith.addf %69, %129 : vector<8x16x16xf32>
    %cst_98 = arith.constant 0.000000e+00 : f32
    %131 = vector.broadcast %cst_98 : f32 to vector<16x16xf32>
    %c2_99 = arith.constant 2 : index
    %c0_100 = arith.constant 0 : index
    %c0_101 = arith.constant 0 : index
    %132 = vector.load %arg8[%c2_99, %c0_100, %c0_101] : memref<4x20x20xf32, #tpu.memory_space<vmem>>, vector<1x16x16xf32>
    %133 = vector.shape_cast %132 : vector<1x16x16xf32> to vector<16x16xf32>
    %c0_102 = arith.constant 0 : index
    %c2_103 = arith.constant 2 : index
    %134 = memref.load %arg3[%c0_102, %c2_103] : memref<9x4xf32, #tpu.memory_space<smem>>
    %135 = vector.broadcast %134 : f32 to vector<16x16xf32>
    %136 = arith.mulf %133, %135 : vector<16x16xf32>
    %137 = arith.addf %131, %136 : vector<16x16xf32>
    %c2_104 = arith.constant 2 : index
    %c0_105 = arith.constant 0 : index
    %c2_106 = arith.constant 2 : index
    %138 = vector.load %arg8[%c2_104, %c0_105, %c2_106] : memref<4x20x20xf32, #tpu.memory_space<vmem>>, vector<1x16x16xf32>
    %139 = vector.shape_cast %138 : vector<1x16x16xf32> to vector<16x16xf32>
    %c1_107 = arith.constant 1 : index
    %c2_108 = arith.constant 2 : index
    %140 = memref.load %arg3[%c1_107, %c2_108] : memref<9x4xf32, #tpu.memory_space<smem>>
    %141 = vector.broadcast %140 : f32 to vector<16x16xf32>
    %142 = arith.mulf %139, %141 : vector<16x16xf32>
    %143 = arith.addf %137, %142 : vector<16x16xf32>
    %c2_109 = arith.constant 2 : index
    %c0_110 = arith.constant 0 : index
    %c4_111 = arith.constant 4 : index
    %144 = vector.load %arg8[%c2_109, %c0_110, %c4_111] : memref<4x20x20xf32, #tpu.memory_space<vmem>>, vector<1x16x16xf32>
    %145 = vector.shape_cast %144 : vector<1x16x16xf32> to vector<16x16xf32>
    %c2_112 = arith.constant 2 : index
    %c2_113 = arith.constant 2 : index
    %146 = memref.load %arg3[%c2_112, %c2_113] : memref<9x4xf32, #tpu.memory_space<smem>>
    %147 = vector.broadcast %146 : f32 to vector<16x16xf32>
    %148 = arith.mulf %145, %147 : vector<16x16xf32>
    %149 = arith.addf %143, %148 : vector<16x16xf32>
    %c2_114 = arith.constant 2 : index
    %c2_115 = arith.constant 2 : index
    %c0_116 = arith.constant 0 : index
    %150 = vector.load %arg8[%c2_114, %c2_115, %c0_116] : memref<4x20x20xf32, #tpu.memory_space<vmem>>, vector<1x16x16xf32>
    %151 = vector.shape_cast %150 : vector<1x16x16xf32> to vector<16x16xf32>
    %c3_117 = arith.constant 3 : index
    %c2_118 = arith.constant 2 : index
    %152 = memref.load %arg3[%c3_117, %c2_118] : memref<9x4xf32, #tpu.memory_space<smem>>
    %153 = vector.broadcast %152 : f32 to vector<16x16xf32>
    %154 = arith.mulf %151, %153 : vector<16x16xf32>
    %155 = arith.addf %149, %154 : vector<16x16xf32>
    %c2_119 = arith.constant 2 : index
    %c2_120 = arith.constant 2 : index
    %c2_121 = arith.constant 2 : index
    %156 = vector.load %arg8[%c2_119, %c2_120, %c2_121] : memref<4x20x20xf32, #tpu.memory_space<vmem>>, vector<1x16x16xf32>
    %157 = vector.shape_cast %156 : vector<1x16x16xf32> to vector<16x16xf32>
    %c4_122 = arith.constant 4 : index
    %c2_123 = arith.constant 2 : index
    %158 = memref.load %arg3[%c4_122, %c2_123] : memref<9x4xf32, #tpu.memory_space<smem>>
    %159 = vector.broadcast %158 : f32 to vector<16x16xf32>
    %160 = arith.mulf %157, %159 : vector<16x16xf32>
    %161 = arith.addf %155, %160 : vector<16x16xf32>
    %c2_124 = arith.constant 2 : index
    %c2_125 = arith.constant 2 : index
    %c4_126 = arith.constant 4 : index
    %162 = vector.load %arg8[%c2_124, %c2_125, %c4_126] : memref<4x20x20xf32, #tpu.memory_space<vmem>>, vector<1x16x16xf32>
    %163 = vector.shape_cast %162 : vector<1x16x16xf32> to vector<16x16xf32>
    %c5_127 = arith.constant 5 : index
    %c2_128 = arith.constant 2 : index
    %164 = memref.load %arg3[%c5_127, %c2_128] : memref<9x4xf32, #tpu.memory_space<smem>>
    %165 = vector.broadcast %164 : f32 to vector<16x16xf32>
    %166 = arith.mulf %163, %165 : vector<16x16xf32>
    %167 = arith.addf %161, %166 : vector<16x16xf32>
    %c2_129 = arith.constant 2 : index
    %c4_130 = arith.constant 4 : index
    %c0_131 = arith.constant 0 : index
    %168 = vector.load %arg8[%c2_129, %c4_130, %c0_131] : memref<4x20x20xf32, #tpu.memory_space<vmem>>, vector<1x16x16xf32>
    %169 = vector.shape_cast %168 : vector<1x16x16xf32> to vector<16x16xf32>
    %c6_132 = arith.constant 6 : index
    %c2_133 = arith.constant 2 : index
    %170 = memref.load %arg3[%c6_132, %c2_133] : memref<9x4xf32, #tpu.memory_space<smem>>
    %171 = vector.broadcast %170 : f32 to vector<16x16xf32>
    %172 = arith.mulf %169, %171 : vector<16x16xf32>
    %173 = arith.addf %167, %172 : vector<16x16xf32>
    %c2_134 = arith.constant 2 : index
    %c4_135 = arith.constant 4 : index
    %c2_136 = arith.constant 2 : index
    %174 = vector.load %arg8[%c2_134, %c4_135, %c2_136] : memref<4x20x20xf32, #tpu.memory_space<vmem>>, vector<1x16x16xf32>
    %175 = vector.shape_cast %174 : vector<1x16x16xf32> to vector<16x16xf32>
    %c7_137 = arith.constant 7 : index
    %c2_138 = arith.constant 2 : index
    %176 = memref.load %arg3[%c7_137, %c2_138] : memref<9x4xf32, #tpu.memory_space<smem>>
    %177 = vector.broadcast %176 : f32 to vector<16x16xf32>
    %178 = arith.mulf %175, %177 : vector<16x16xf32>
    %179 = arith.addf %173, %178 : vector<16x16xf32>
    %c2_139 = arith.constant 2 : index
    %c4_140 = arith.constant 4 : index
    %c4_141 = arith.constant 4 : index
    %180 = vector.load %arg8[%c2_139, %c4_140, %c4_141] : memref<4x20x20xf32, #tpu.memory_space<vmem>>, vector<1x16x16xf32>
    %181 = vector.shape_cast %180 : vector<1x16x16xf32> to vector<16x16xf32>
    %c8_142 = arith.constant 8 : index
    %c2_143 = arith.constant 2 : index
    %182 = memref.load %arg3[%c8_142, %c2_143] : memref<9x4xf32, #tpu.memory_space<smem>>
    %183 = vector.broadcast %182 : f32 to vector<16x16xf32>
    %184 = arith.mulf %181, %183 : vector<16x16xf32>
    %185 = arith.addf %179, %184 : vector<16x16xf32>
    %c0_144 = arith.constant 0 : index
    %c0_145 = arith.constant 0 : index
    %c2_146 = arith.constant 2 : index
    %186 = vector.load %arg4[%c0_144, %c0_145, %c2_146] : memref<8x1x4xf32, #tpu.memory_space<vmem>>, vector<8x1x1xf32>
    %187 = vector.shape_cast %185 : vector<16x16xf32> to vector<1x16x16xf32>
    %188 = vector.broadcast %186 : vector<8x1x1xf32> to vector<8x16x16xf32>
    %189 = vector.broadcast %187 : vector<1x16x16xf32> to vector<8x16x16xf32>
    %190 = arith.mulf %188, %189 : vector<8x16x16xf32>
    %191 = arith.addf %130, %190 : vector<8x16x16xf32>
    %cst_147 = arith.constant 0.000000e+00 : f32
    %192 = vector.broadcast %cst_147 : f32 to vector<16x16xf32>
    %c3_148 = arith.constant 3 : index
    %c0_149 = arith.constant 0 : index
    %c0_150 = arith.constant 0 : index
    %193 = vector.load %arg8[%c3_148, %c0_149, %c0_150] : memref<4x20x20xf32, #tpu.memory_space<vmem>>, vector<1x16x16xf32>
    %194 = vector.shape_cast %193 : vector<1x16x16xf32> to vector<16x16xf32>
    %c0_151 = arith.constant 0 : index
    %c3_152 = arith.constant 3 : index
    %195 = memref.load %arg3[%c0_151, %c3_152] : memref<9x4xf32, #tpu.memory_space<smem>>
    %196 = vector.broadcast %195 : f32 to vector<16x16xf32>
    %197 = arith.mulf %194, %196 : vector<16x16xf32>
    %198 = arith.addf %192, %197 : vector<16x16xf32>
    %c3_153 = arith.constant 3 : index
    %c0_154 = arith.constant 0 : index
    %c2_155 = arith.constant 2 : index
    %199 = vector.load %arg8[%c3_153, %c0_154, %c2_155] : memref<4x20x20xf32, #tpu.memory_space<vmem>>, vector<1x16x16xf32>
    %200 = vector.shape_cast %199 : vector<1x16x16xf32> to vector<16x16xf32>
    %c1_156 = arith.constant 1 : index
    %c3_157 = arith.constant 3 : index
    %201 = memref.load %arg3[%c1_156, %c3_157] : memref<9x4xf32, #tpu.memory_space<smem>>
    %202 = vector.broadcast %201 : f32 to vector<16x16xf32>
    %203 = arith.mulf %200, %202 : vector<16x16xf32>
    %204 = arith.addf %198, %203 : vector<16x16xf32>
    %c3_158 = arith.constant 3 : index
    %c0_159 = arith.constant 0 : index
    %c4_160 = arith.constant 4 : index
    %205 = vector.load %arg8[%c3_158, %c0_159, %c4_160] : memref<4x20x20xf32, #tpu.memory_space<vmem>>, vector<1x16x16xf32>
    %206 = vector.shape_cast %205 : vector<1x16x16xf32> to vector<16x16xf32>
    %c2_161 = arith.constant 2 : index
    %c3_162 = arith.constant 3 : index
    %207 = memref.load %arg3[%c2_161, %c3_162] : memref<9x4xf32, #tpu.memory_space<smem>>
    %208 = vector.broadcast %207 : f32 to vector<16x16xf32>
    %209 = arith.mulf %206, %208 : vector<16x16xf32>
    %210 = arith.addf %204, %209 : vector<16x16xf32>
    %c3_163 = arith.constant 3 : index
    %c2_164 = arith.constant 2 : index
    %c0_165 = arith.constant 0 : index
    %211 = vector.load %arg8[%c3_163, %c2_164, %c0_165] : memref<4x20x20xf32, #tpu.memory_space<vmem>>, vector<1x16x16xf32>
    %212 = vector.shape_cast %211 : vector<1x16x16xf32> to vector<16x16xf32>
    %c3_166 = arith.constant 3 : index
    %c3_167 = arith.constant 3 : index
    %213 = memref.load %arg3[%c3_166, %c3_167] : memref<9x4xf32, #tpu.memory_space<smem>>
    %214 = vector.broadcast %213 : f32 to vector<16x16xf32>
    %215 = arith.mulf %212, %214 : vector<16x16xf32>
    %216 = arith.addf %210, %215 : vector<16x16xf32>
    %c3_168 = arith.constant 3 : index
    %c2_169 = arith.constant 2 : index
    %c2_170 = arith.constant 2 : index
    %217 = vector.load %arg8[%c3_168, %c2_169, %c2_170] : memref<4x20x20xf32, #tpu.memory_space<vmem>>, vector<1x16x16xf32>
    %218 = vector.shape_cast %217 : vector<1x16x16xf32> to vector<16x16xf32>
    %c4_171 = arith.constant 4 : index
    %c3_172 = arith.constant 3 : index
    %219 = memref.load %arg3[%c4_171, %c3_172] : memref<9x4xf32, #tpu.memory_space<smem>>
    %220 = vector.broadcast %219 : f32 to vector<16x16xf32>
    %221 = arith.mulf %218, %220 : vector<16x16xf32>
    %222 = arith.addf %216, %221 : vector<16x16xf32>
    %c3_173 = arith.constant 3 : index
    %c2_174 = arith.constant 2 : index
    %c4_175 = arith.constant 4 : index
    %223 = vector.load %arg8[%c3_173, %c2_174, %c4_175] : memref<4x20x20xf32, #tpu.memory_space<vmem>>, vector<1x16x16xf32>
    %224 = vector.shape_cast %223 : vector<1x16x16xf32> to vector<16x16xf32>
    %c5_176 = arith.constant 5 : index
    %c3_177 = arith.constant 3 : index
    %225 = memref.load %arg3[%c5_176, %c3_177] : memref<9x4xf32, #tpu.memory_space<smem>>
    %226 = vector.broadcast %225 : f32 to vector<16x16xf32>
    %227 = arith.mulf %224, %226 : vector<16x16xf32>
    %228 = arith.addf %222, %227 : vector<16x16xf32>
    %c3_178 = arith.constant 3 : index
    %c4_179 = arith.constant 4 : index
    %c0_180 = arith.constant 0 : index
    %229 = vector.load %arg8[%c3_178, %c4_179, %c0_180] : memref<4x20x20xf32, #tpu.memory_space<vmem>>, vector<1x16x16xf32>
    %230 = vector.shape_cast %229 : vector<1x16x16xf32> to vector<16x16xf32>
    %c6_181 = arith.constant 6 : index
    %c3_182 = arith.constant 3 : index
    %231 = memref.load %arg3[%c6_181, %c3_182] : memref<9x4xf32, #tpu.memory_space<smem>>
    %232 = vector.broadcast %231 : f32 to vector<16x16xf32>
    %233 = arith.mulf %230, %232 : vector<16x16xf32>
    %234 = arith.addf %228, %233 : vector<16x16xf32>
    %c3_183 = arith.constant 3 : index
    %c4_184 = arith.constant 4 : index
    %c2_185 = arith.constant 2 : index
    %235 = vector.load %arg8[%c3_183, %c4_184, %c2_185] : memref<4x20x20xf32, #tpu.memory_space<vmem>>, vector<1x16x16xf32>
    %236 = vector.shape_cast %235 : vector<1x16x16xf32> to vector<16x16xf32>
    %c7_186 = arith.constant 7 : index
    %c3_187 = arith.constant 3 : index
    %237 = memref.load %arg3[%c7_186, %c3_187] : memref<9x4xf32, #tpu.memory_space<smem>>
    %238 = vector.broadcast %237 : f32 to vector<16x16xf32>
    %239 = arith.mulf %236, %238 : vector<16x16xf32>
    %240 = arith.addf %234, %239 : vector<16x16xf32>
    %c3_188 = arith.constant 3 : index
    %c4_189 = arith.constant 4 : index
    %c4_190 = arith.constant 4 : index
    %241 = vector.load %arg8[%c3_188, %c4_189, %c4_190] : memref<4x20x20xf32, #tpu.memory_space<vmem>>, vector<1x16x16xf32>
    %242 = vector.shape_cast %241 : vector<1x16x16xf32> to vector<16x16xf32>
    %c8_191 = arith.constant 8 : index
    %c3_192 = arith.constant 3 : index
    %243 = memref.load %arg3[%c8_191, %c3_192] : memref<9x4xf32, #tpu.memory_space<smem>>
    %244 = vector.broadcast %243 : f32 to vector<16x16xf32>
    %245 = arith.mulf %242, %244 : vector<16x16xf32>
    %246 = arith.addf %240, %245 : vector<16x16xf32>
    %c0_193 = arith.constant 0 : index
    %c0_194 = arith.constant 0 : index
    %c3_195 = arith.constant 3 : index
    %247 = vector.load %arg4[%c0_193, %c0_194, %c3_195] : memref<8x1x4xf32, #tpu.memory_space<vmem>>, vector<8x1x1xf32>
    %248 = vector.shape_cast %246 : vector<16x16xf32> to vector<1x16x16xf32>
    %249 = vector.broadcast %247 : vector<8x1x1xf32> to vector<8x16x16xf32>
    %250 = vector.broadcast %248 : vector<1x16x16xf32> to vector<8x16x16xf32>
    %251 = arith.mulf %249, %250 : vector<8x16x16xf32>
    %252 = arith.addf %191, %251 : vector<8x16x16xf32>
    %c0_196 = arith.constant 0 : index
    %c0_197 = arith.constant 0 : index
    %c0_198 = arith.constant 0 : index
    %253 = vector.load %arg9[%c0_196, %c0_197, %c0_198] : memref<8x16x16xf32, #tpu.memory_space<vmem>>, vector<8x16x16xf32>
    tpu.vector_store %arg9[%c0_196, %c0_197, %c0_198], %252 {strides = array<i32>} : memref<8x16x16xf32, #tpu.memory_space<vmem>>, vector<8x16x16xf32>,
    %c0_199 = arith.constant 0 : index
    %c0_200 = arith.constant 0 : index
    %c0_201 = arith.constant 0 : index
    %254 = vector.load %arg9[%c0_199, %c0_200, %c0_201] : memref<8x16x16xf32, #tpu.memory_space<vmem>>, vector<8x1x16xf32>
    %255 = vector.shape_cast %254 : vector<8x1x16xf32> to vector<8x16xf32>
    %256 = arith.index_cast %arg1 : i32 to index
    %c0_202 = arith.constant 0 : index
    %c0_203 = arith.constant 0 : index
    %257 = vector.load %arg7[%256, %c0_202, %c0_203] : memref<2x8x256xf32, #tpu.memory_space<vmem>>, vector<1x8x16xf32>
    %258 = vector.shape_cast %257 : vector<1x8x16xf32> to vector<8x16xf32>
    %259 = vector.shape_cast %255 : vector<8x16xf32> to vector<1x8x16xf32>
    tpu.vector_store %arg7[%256, %c0_202, %c0_203], %259 {strides = array<i32>} : memref<2x8x256xf32, #tpu.memory_space<vmem>>, vector<1x8x16xf32>,
    %c0_204 = arith.constant 0 : index
    %c1_205 = arith.constant 1 : index
    %c0_206 = arith.constant 0 : index
    %260 = vector.load %arg9[%c0_204, %c1_205, %c0_206] : memref<8x16x16xf32, #tpu.memory_space<vmem>>, vector<8x1x16xf32>
    %261 = vector.shape_cast %260 : vector<8x1x16xf32> to vector<8x16xf32>
    %262 = arith.index_cast %arg1 : i32 to index
    %c0_207 = arith.constant 0 : index
    %c16 = arith.constant 16 : index
    %263 = vector.load %arg7[%262, %c0_207, %c16] : memref<2x8x256xf32, #tpu.memory_space<vmem>>, vector<1x8x16xf32>
    %264 = vector.shape_cast %263 : vector<1x8x16xf32> to vector<8x16xf32>
    %265 = vector.shape_cast %261 : vector<8x16xf32> to vector<1x8x16xf32>
    tpu.vector_store %arg7[%262, %c0_207, %c16], %265 {strides = array<i32>} : memref<2x8x256xf32, #tpu.memory_space<vmem>>, vector<1x8x16xf32>,
    %c0_208 = arith.constant 0 : index
    %c2_209 = arith.constant 2 : index
    %c0_210 = arith.constant 0 : index
    %266 = vector.load %arg9[%c0_208, %c2_209, %c0_210] : memref<8x16x16xf32, #tpu.memory_space<vmem>>, vector<8x1x16xf32>
    %267 = vector.shape_cast %266 : vector<8x1x16xf32> to vector<8x16xf32>
    %268 = arith.index_cast %arg1 : i32 to index
    %c0_211 = arith.constant 0 : index
    %c32 = arith.constant 32 : index
    %269 = vector.load %arg7[%268, %c0_211, %c32] : memref<2x8x256xf32, #tpu.memory_space<vmem>>, vector<1x8x16xf32>
    %270 = vector.shape_cast %269 : vector<1x8x16xf32> to vector<8x16xf32>
    %271 = vector.shape_cast %267 : vector<8x16xf32> to vector<1x8x16xf32>
    tpu.vector_store %arg7[%268, %c0_211, %c32], %271 {strides = array<i32>} : memref<2x8x256xf32, #tpu.memory_space<vmem>>, vector<1x8x16xf32>,
    %c0_212 = arith.constant 0 : index
    %c3_213 = arith.constant 3 : index
    %c0_214 = arith.constant 0 : index
    %272 = vector.load %arg9[%c0_212, %c3_213, %c0_214] : memref<8x16x16xf32, #tpu.memory_space<vmem>>, vector<8x1x16xf32>
    %273 = vector.shape_cast %272 : vector<8x1x16xf32> to vector<8x16xf32>
    %274 = arith.index_cast %arg1 : i32 to index
    %c0_215 = arith.constant 0 : index
    %c48 = arith.constant 48 : index
    %275 = vector.load %arg7[%274, %c0_215, %c48] : memref<2x8x256xf32, #tpu.memory_space<vmem>>, vector<1x8x16xf32>
    %276 = vector.shape_cast %275 : vector<1x8x16xf32> to vector<8x16xf32>
    %277 = vector.shape_cast %273 : vector<8x16xf32> to vector<1x8x16xf32>
    tpu.vector_store %arg7[%274, %c0_215, %c48], %277 {strides = array<i32>} : memref<2x8x256xf32, #tpu.memory_space<vmem>>, vector<1x8x16xf32>,
    %c0_216 = arith.constant 0 : index
    %c4_217 = arith.constant 4 : index
    %c0_218 = arith.constant 0 : index
    %278 = vector.load %arg9[%c0_216, %c4_217, %c0_218] : memref<8x16x16xf32, #tpu.memory_space<vmem>>, vector<8x1x16xf32>
    %279 = vector.shape_cast %278 : vector<8x1x16xf32> to vector<8x16xf32>
    %280 = arith.index_cast %arg1 : i32 to index
    %c0_219 = arith.constant 0 : index
    %c64 = arith.constant 64 : index
    %281 = vector.load %arg7[%280, %c0_219, %c64] : memref<2x8x256xf32, #tpu.memory_space<vmem>>, vector<1x8x16xf32>
    %282 = vector.shape_cast %281 : vector<1x8x16xf32> to vector<8x16xf32>
    %283 = vector.shape_cast %279 : vector<8x16xf32> to vector<1x8x16xf32>
    tpu.vector_store %arg7[%280, %c0_219, %c64], %283 {strides = array<i32>} : memref<2x8x256xf32, #tpu.memory_space<vmem>>, vector<1x8x16xf32>,
    %c0_220 = arith.constant 0 : index
    %c5_221 = arith.constant 5 : index
    %c0_222 = arith.constant 0 : index
    %284 = vector.load %arg9[%c0_220, %c5_221, %c0_222] : memref<8x16x16xf32, #tpu.memory_space<vmem>>, vector<8x1x16xf32>
    %285 = vector.shape_cast %284 : vector<8x1x16xf32> to vector<8x16xf32>
    %286 = arith.index_cast %arg1 : i32 to index
    %c0_223 = arith.constant 0 : index
    %c80 = arith.constant 80 : index
    %287 = vector.load %arg7[%286, %c0_223, %c80] : memref<2x8x256xf32, #tpu.memory_space<vmem>>, vector<1x8x16xf32>
    %288 = vector.shape_cast %287 : vector<1x8x16xf32> to vector<8x16xf32>
    %289 = vector.shape_cast %285 : vector<8x16xf32> to vector<1x8x16xf32>
    tpu.vector_store %arg7[%286, %c0_223, %c80], %289 {strides = array<i32>} : memref<2x8x256xf32, #tpu.memory_space<vmem>>, vector<1x8x16xf32>,
    %c0_224 = arith.constant 0 : index
    %c6_225 = arith.constant 6 : index
    %c0_226 = arith.constant 0 : index
    %290 = vector.load %arg9[%c0_224, %c6_225, %c0_226] : memref<8x16x16xf32, #tpu.memory_space<vmem>>, vector<8x1x16xf32>
    %291 = vector.shape_cast %290 : vector<8x1x16xf32> to vector<8x16xf32>
    %292 = arith.index_cast %arg1 : i32 to index
    %c0_227 = arith.constant 0 : index
    %c96 = arith.constant 96 : index
    %293 = vector.load %arg7[%292, %c0_227, %c96] : memref<2x8x256xf32, #tpu.memory_space<vmem>>, vector<1x8x16xf32>
    %294 = vector.shape_cast %293 : vector<1x8x16xf32> to vector<8x16xf32>
    %295 = vector.shape_cast %291 : vector<8x16xf32> to vector<1x8x16xf32>
    tpu.vector_store %arg7[%292, %c0_227, %c96], %295 {strides = array<i32>} : memref<2x8x256xf32, #tpu.memory_space<vmem>>, vector<1x8x16xf32>,
    %c0_228 = arith.constant 0 : index
    %c7_229 = arith.constant 7 : index
    %c0_230 = arith.constant 0 : index
    %296 = vector.load %arg9[%c0_228, %c7_229, %c0_230] : memref<8x16x16xf32, #tpu.memory_space<vmem>>, vector<8x1x16xf32>
    %297 = vector.shape_cast %296 : vector<8x1x16xf32> to vector<8x16xf32>
    %298 = arith.index_cast %arg1 : i32 to index
    %c0_231 = arith.constant 0 : index
    %c112 = arith.constant 112 : index
    %299 = vector.load %arg7[%298, %c0_231, %c112] : memref<2x8x256xf32, #tpu.memory_space<vmem>>, vector<1x8x16xf32>
    %300 = vector.shape_cast %299 : vector<1x8x16xf32> to vector<8x16xf32>
    %301 = vector.shape_cast %297 : vector<8x16xf32> to vector<1x8x16xf32>
    tpu.vector_store %arg7[%298, %c0_231, %c112], %301 {strides = array<i32>} : memref<2x8x256xf32, #tpu.memory_space<vmem>>, vector<1x8x16xf32>,
    %c0_232 = arith.constant 0 : index
    %c8_233 = arith.constant 8 : index
    %c0_234 = arith.constant 0 : index
    %302 = vector.load %arg9[%c0_232, %c8_233, %c0_234] : memref<8x16x16xf32, #tpu.memory_space<vmem>>, vector<8x1x16xf32>
    %303 = vector.shape_cast %302 : vector<8x1x16xf32> to vector<8x16xf32>
    %304 = arith.index_cast %arg1 : i32 to index
    %c0_235 = arith.constant 0 : index
    %c128 = arith.constant 128 : index
    %305 = vector.load %arg7[%304, %c0_235, %c128] : memref<2x8x256xf32, #tpu.memory_space<vmem>>, vector<1x8x16xf32>
    %306 = vector.shape_cast %305 : vector<1x8x16xf32> to vector<8x16xf32>
    %307 = vector.shape_cast %303 : vector<8x16xf32> to vector<1x8x16xf32>
    tpu.vector_store %arg7[%304, %c0_235, %c128], %307 {strides = array<i32>} : memref<2x8x256xf32, #tpu.memory_space<vmem>>, vector<1x8x16xf32>,
    %c0_236 = arith.constant 0 : index
    %c9 = arith.constant 9 : index
    %c0_237 = arith.constant 0 : index
    %308 = vector.load %arg9[%c0_236, %c9, %c0_237] : memref<8x16x16xf32, #tpu.memory_space<vmem>>, vector<8x1x16xf32>
    %309 = vector.shape_cast %308 : vector<8x1x16xf32> to vector<8x16xf32>
    %310 = arith.index_cast %arg1 : i32 to index
    %c0_238 = arith.constant 0 : index
    %c144 = arith.constant 144 : index
    %311 = vector.load %arg7[%310, %c0_238, %c144] : memref<2x8x256xf32, #tpu.memory_space<vmem>>, vector<1x8x16xf32>
    %312 = vector.shape_cast %311 : vector<1x8x16xf32> to vector<8x16xf32>
    %313 = vector.shape_cast %309 : vector<8x16xf32> to vector<1x8x16xf32>
    tpu.vector_store %arg7[%310, %c0_238, %c144], %313 {strides = array<i32>} : memref<2x8x256xf32, #tpu.memory_space<vmem>>, vector<1x8x16xf32>,
    %c0_239 = arith.constant 0 : index
    %c10 = arith.constant 10 : index
    %c0_240 = arith.constant 0 : index
    %314 = vector.load %arg9[%c0_239, %c10, %c0_240] : memref<8x16x16xf32, #tpu.memory_space<vmem>>, vector<8x1x16xf32>
    %315 = vector.shape_cast %314 : vector<8x1x16xf32> to vector<8x16xf32>
    %316 = arith.index_cast %arg1 : i32 to index
    %c0_241 = arith.constant 0 : index
    %c160 = arith.constant 160 : index
    %317 = vector.load %arg7[%316, %c0_241, %c160] : memref<2x8x256xf32, #tpu.memory_space<vmem>>, vector<1x8x16xf32>
    %318 = vector.shape_cast %317 : vector<1x8x16xf32> to vector<8x16xf32>
    %319 = vector.shape_cast %315 : vector<8x16xf32> to vector<1x8x16xf32>
    tpu.vector_store %arg7[%316, %c0_241, %c160], %319 {strides = array<i32>} : memref<2x8x256xf32, #tpu.memory_space<vmem>>, vector<1x8x16xf32>,
    %c0_242 = arith.constant 0 : index
    %c11 = arith.constant 11 : index
    %c0_243 = arith.constant 0 : index
    %320 = vector.load %arg9[%c0_242, %c11, %c0_243] : memref<8x16x16xf32, #tpu.memory_space<vmem>>, vector<8x1x16xf32>
    %321 = vector.shape_cast %320 : vector<8x1x16xf32> to vector<8x16xf32>
    %322 = arith.index_cast %arg1 : i32 to index
    %c0_244 = arith.constant 0 : index
    %c176 = arith.constant 176 : index
    %323 = vector.load %arg7[%322, %c0_244, %c176] : memref<2x8x256xf32, #tpu.memory_space<vmem>>, vector<1x8x16xf32>
    %324 = vector.shape_cast %323 : vector<1x8x16xf32> to vector<8x16xf32>
    %325 = vector.shape_cast %321 : vector<8x16xf32> to vector<1x8x16xf32>
    tpu.vector_store %arg7[%322, %c0_244, %c176], %325 {strides = array<i32>} : memref<2x8x256xf32, #tpu.memory_space<vmem>>, vector<1x8x16xf32>,
    %c0_245 = arith.constant 0 : index
    %c12 = arith.constant 12 : index
    %c0_246 = arith.constant 0 : index
    %326 = vector.load %arg9[%c0_245, %c12, %c0_246] : memref<8x16x16xf32, #tpu.memory_space<vmem>>, vector<8x1x16xf32>
    %327 = vector.shape_cast %326 : vector<8x1x16xf32> to vector<8x16xf32>
    %328 = arith.index_cast %arg1 : i32 to index
    %c0_247 = arith.constant 0 : index
    %c192 = arith.constant 192 : index
    %329 = vector.load %arg7[%328, %c0_247, %c192] : memref<2x8x256xf32, #tpu.memory_space<vmem>>, vector<1x8x16xf32>
    %330 = vector.shape_cast %329 : vector<1x8x16xf32> to vector<8x16xf32>
    %331 = vector.shape_cast %327 : vector<8x16xf32> to vector<1x8x16xf32>
    tpu.vector_store %arg7[%328, %c0_247, %c192], %331 {strides = array<i32>} : memref<2x8x256xf32, #tpu.memory_space<vmem>>, vector<1x8x16xf32>,
    %c0_248 = arith.constant 0 : index
    %c13 = arith.constant 13 : index
    %c0_249 = arith.constant 0 : index
    %332 = vector.load %arg9[%c0_248, %c13, %c0_249] : memref<8x16x16xf32, #tpu.memory_space<vmem>>, vector<8x1x16xf32>
    %333 = vector.shape_cast %332 : vector<8x1x16xf32> to vector<8x16xf32>
    %334 = arith.index_cast %arg1 : i32 to index
    %c0_250 = arith.constant 0 : index
    %c208 = arith.constant 208 : index
    %335 = vector.load %arg7[%334, %c0_250, %c208] : memref<2x8x256xf32, #tpu.memory_space<vmem>>, vector<1x8x16xf32>
    %336 = vector.shape_cast %335 : vector<1x8x16xf32> to vector<8x16xf32>
    %337 = vector.shape_cast %333 : vector<8x16xf32> to vector<1x8x16xf32>
    tpu.vector_store %arg7[%334, %c0_250, %c208], %337 {strides = array<i32>} : memref<2x8x256xf32, #tpu.memory_space<vmem>>, vector<1x8x16xf32>,
    %c0_251 = arith.constant 0 : index
    %c14 = arith.constant 14 : index
    %c0_252 = arith.constant 0 : index
    %338 = vector.load %arg9[%c0_251, %c14, %c0_252] : memref<8x16x16xf32, #tpu.memory_space<vmem>>, vector<8x1x16xf32>
    %339 = vector.shape_cast %338 : vector<8x1x16xf32> to vector<8x16xf32>
    %340 = arith.index_cast %arg1 : i32 to index
    %c0_253 = arith.constant 0 : index
    %c224 = arith.constant 224 : index
    %341 = vector.load %arg7[%340, %c0_253, %c224] : memref<2x8x256xf32, #tpu.memory_space<vmem>>, vector<1x8x16xf32>
    %342 = vector.shape_cast %341 : vector<1x8x16xf32> to vector<8x16xf32>
    %343 = vector.shape_cast %339 : vector<8x16xf32> to vector<1x8x16xf32>
    tpu.vector_store %arg7[%340, %c0_253, %c224], %343 {strides = array<i32>} : memref<2x8x256xf32, #tpu.memory_space<vmem>>, vector<1x8x16xf32>,
    %c0_254 = arith.constant 0 : index
    %c15 = arith.constant 15 : index
    %c0_255 = arith.constant 0 : index
    %344 = vector.load %arg9[%c0_254, %c15, %c0_255] : memref<8x16x16xf32, #tpu.memory_space<vmem>>, vector<8x1x16xf32>
    %345 = vector.shape_cast %344 : vector<8x1x16xf32> to vector<8x16xf32>
    %346 = arith.index_cast %arg1 : i32 to index
    %c0_256 = arith.constant 0 : index
    %c240 = arith.constant 240 : index
    %347 = vector.load %arg7[%346, %c0_256, %c240] : memref<2x8x256xf32, #tpu.memory_space<vmem>>, vector<1x8x16xf32>
    %348 = vector.shape_cast %347 : vector<1x8x16xf32> to vector<8x16xf32>
    %349 = vector.shape_cast %345 : vector<8x16xf32> to vector<1x8x16xf32>
    tpu.vector_store %arg7[%346, %c0_256, %c240], %349 {strides = array<i32>} : memref<2x8x256xf32, #tpu.memory_space<vmem>>, vector<1x8x16xf32>,
    %c1_i32 = arith.constant 1 : i32
    %350 = arith.cmpi eq, %arg1, %c1_i32 : i32
    %351 = arith.extui %350 : i1 to i32
    %c0_i32_257 = arith.constant 0 : i32
    %352 = arith.cmpi ne, %351, %c0_i32_257 : i32
    scf.if %352 {
      %c0_258 = arith.constant 0 : index
      %c0_259 = arith.constant 0 : index
      %c0_260 = arith.constant 0 : index
      %353 = vector.load %arg7[%c0_258, %c0_259, %c0_260] : memref<2x8x256xf32, #tpu.memory_space<vmem>>, vector<2x8x256xf32>
      %cst_261 = arith.constant dense<0.000000e+00> : vector<2x8xf32>
      %354 = vector.multi_reduction <add>, %353, %cst_261 [2] : vector<2x8x256xf32> to vector<2x8xf32>
      %355 = vector.shape_cast %354 : vector<2x8xf32> to vector<2x8x1xf32>
      %cst_262 = arith.constant dense<0.000000e+00> : vector<8x1xf32>
      %356 = vector.multi_reduction <add>, %355, %cst_262 [0] : vector<2x8x1xf32> to vector<8x1xf32>
      %357 = arith.mulf %353, %353 : vector<2x8x256xf32>
      %cst_263 = arith.constant dense<0.000000e+00> : vector<2x8xf32>
      %358 = vector.multi_reduction <add>, %357, %cst_263 [2] : vector<2x8x256xf32> to vector<2x8xf32>
      %359 = vector.shape_cast %358 : vector<2x8xf32> to vector<2x8x1xf32>
      %cst_264 = arith.constant dense<0.000000e+00> : vector<8x1xf32>
      %360 = vector.multi_reduction <add>, %359, %cst_264 [0] : vector<2x8x1xf32> to vector<8x1xf32>
      %cst_265 = arith.constant 0.001953125 : f32
      %361 = vector.broadcast %cst_265 : f32 to vector<8x1xf32>
      %362 = arith.mulf %356, %361 : vector<8x1xf32>
      %cst_266 = arith.constant 0.001953125 : f32
      %363 = vector.broadcast %cst_266 : f32 to vector<8x1xf32>
      %364 = arith.mulf %360, %363 : vector<8x1xf32>
      %365 = arith.mulf %362, %362 : vector<8x1xf32>
      %366 = arith.subf %364, %365 : vector<8x1xf32>
      %c0_267 = arith.constant 0 : index
      %c0_268 = arith.constant 0 : index
      %367 = vector.load %arg5[%c0_267, %c0_268] : memref<8x1xf32, #tpu.memory_space<vmem>>, vector<8x1xf32>
      %cst_269 = arith.constant 1.000000e-03 : f32
      %368 = vector.broadcast %cst_269 : f32 to vector<8x1xf32>
      %369 = arith.addf %366, %368 : vector<8x1xf32>
      %370 = math.rsqrt %369 : vector<8x1xf32>
      %371 = arith.mulf %367, %370 : vector<8x1xf32>
      %c0_270 = arith.constant 0 : index
      %c0_271 = arith.constant 0 : index
      %372 = vector.load %arg6[%c0_270, %c0_271] : memref<8x1xf32, #tpu.memory_space<vmem>>, vector<8x1xf32>
      %373 = arith.mulf %362, %371 : vector<8x1xf32>
      %374 = arith.subf %372, %373 : vector<8x1xf32>
      %375 = vector.shape_cast %371 : vector<8x1xf32> to vector<1x8x1xf32>
      %376 = vector.broadcast %375 : vector<1x8x1xf32> to vector<2x8x256xf32>
      %377 = arith.mulf %353, %376 : vector<2x8x256xf32>
      %378 = vector.shape_cast %374 : vector<8x1xf32> to vector<1x8x1xf32>
      %379 = vector.broadcast %378 : vector<1x8x1xf32> to vector<2x8x256xf32>
      %380 = arith.addf %377, %379 : vector<2x8x256xf32>
      %c0_272 = arith.constant 0 : index
      %c0_273 = arith.constant 0 : index
      %c0_274 = arith.constant 0 : index
      %381 = vector.load %arg7[%c0_272, %c0_273, %c0_274] : memref<2x8x256xf32, #tpu.memory_space<vmem>>, vector<2x8x256xf32>
      tpu.vector_store %arg7[%c0_272, %c0_273, %c0_274], %380 {strides = array<i32>} : memref<2x8x256xf32, #tpu.memory_space<vmem>>, vector<2x8x256xf32>,
    } else {
    }
    return
  }
  func.func @transform_0(%arg0: i32, %arg1: i32) -> (i32, i32, i32, i32) {
    %c0_i32 = arith.constant 0 : i32
    %c0_i32_0 = arith.constant 0 : i32
    %c0_i32_1 = arith.constant 0 : i32
    %c0_i32_2 = arith.constant 0 : i32
    return %arg1, %c0_i32, %c0_i32_0, %c0_i32_1 : i32, i32, i32, i32
  }
  func.func @transform_1(%arg0: i32, %arg1: i32) -> (i32, i32) {
    %c0_i32 = arith.constant 0 : i32
    %c0_i32_0 = arith.constant 0 : i32
    %c0_i32_1 = arith.constant 0 : i32
    return %c0_i32, %c0_i32_0 : i32, i32
  }
  func.func @transform_2(%arg0: i32, %arg1: i32) -> (i32, i32, i32) {
    %c0_i32 = arith.constant 0 : i32
    %c0_i32_0 = arith.constant 0 : i32
    %c0_i32_1 = arith.constant 0 : i32
    return %arg0, %c0_i32, %c0_i32_0 : i32, i32, i32
  }
  func.func @transform_3(%arg0: i32, %arg1: i32) -> (i32, i32) {
    %c0_i32 = arith.constant 0 : i32
    %c0_i32_0 = arith.constant 0 : i32
    return %arg0, %c0_i32 : i32, i32
  }
  func.func @transform_4(%arg0: i32, %arg1: i32) -> (i32, i32) {
    %c0_i32 = arith.constant 0 : i32
    %c0_i32_0 = arith.constant 0 : i32
    return %arg0, %c0_i32 : i32, i32
  }
  func.func @transform_5(%arg0: i32, %arg1: i32) -> (i32, i32, i32) {
    %c0_i32 = arith.constant 0 : i32
    %c0_i32_0 = arith.constant 0 : i32
    %c0_i32_1 = arith.constant 0 : i32
    return %c0_i32, %arg0, %c0_i32_0 : i32, i32, i32
  }
}

</mosaic_0001>

<bundles_post_ra>
// kernel: dilconv_forward.1
= control target key start
LH: loop header
LB: loop body
LE: loop exit
PB: predicated region body
PF: predicated region fallthrough
CT: control target
= control target key end

     0   :  { %10 = vsyncpa [#allocation5], 0  ;;  %s3002_s0 = inlined_call_operand.hbm [shape: f32[2,4,16,16], index: 0, kind: input, shape index: {}]   ;;  %s3003_s1 = inlined_call_operand.vmem [shape: f32[9,4], index: 1, kind: input, shape index: {}]   ;;  %s3004_s2 = inlined_call_operand.vmem [shape: f32[8,1,4], index: 2, kind: input, shape index: {}]   ;;  %s3005_s3 = inlined_call_operand.vmem [shape: f32[8,1], index: 3, kind: input, shape index: {}]   ;;  %s3006_s4 = inlined_call_operand.vmem [shape: f32[8,1], index: 4, kind: input, shape index: {}]   ;;  %s3007_s5 = inlined_call_operand.vmem [shape: f32[2,8,256], index: 5, kind: output, shape index: {}]  }
   0x1   :  { %12 = vsyncpa [#allocation5 + $0x1], 0 }
   0x2   :  { %13 = vsyncpa [#allocation6], 0  ;;  %s2216_s18 = smov 0   ;;  %s2218_s19 = smov 0  }
   0x3   :  { %s2220_s20 = smov 0   ;;  %s2222_s21 = smov 0  }
   0x4   :  { %s2224_s22 = smov 0   ;;  %s2226_s23 = smov 0  }
   0x5 LB: > { %s1901_s24 = sadd.s32 4294967295, %s2164_s23   ;;  %p51_p0 = scmp.ne.s32.totalorder %s2148_s19, %s2144_s18  ;;  %s2164_s23 = sphi %s2226_s23, %s19_s23   ;;  %s2160_s22 = sphi %s2224_s22, %s3022_s22   ;;  %s2156_s21 = sphi %s2222_s21, %s3021_s21   ;;  %s2152_s20 = sphi %s2220_s20, %s3020_s20   ;;  %s2148_s19 = sphi %s2218_s19, %s3019_s19   ;;  %s2144_s18 = sphi %s2216_s18, %s3018_s18  }
   0x6   : > { %p2246_p1 = scmp.eq.s32.totalorder %s1901_s24, 0  ;;  %p1902_p2 = scmp.ge.s32.totalorder %s2164_s23, 1 }
   0x7   : > { %p187_p3 = scmp.lt.s32.totalorder %s2164_s23, 3  ;;  %s199_s29 = sshll.u32 %s3003_s1, 4  ;;  %s200_s29 = int_to_ptr.vmem [resolvable:$true] %s199_s29 }
   0x8   : > { %s3011_s25 = scalar_select %p2246_p1, 1, 0 }
   0x9   : > { %p2254_p4 = por %p2246_p1, %p51_p0  ;;  %p2261_p5 = pnand %p1902_p2, %p187_p3 }
   0xa   : > { %s28_s7 = sadd.s32 1, %s2160_s22  ;;  %s2065_s8 = scalar_lea.vmem %s200_s29, 256 }
   0xb   : > { %s3012_s26 = scalar_select %p2254_p4, 1, 0 }
   0xc   : > { %p1972_p6 = pneg %p2261_p5  ;;  %p2066_p8 = scmp.ne.s32.totalorder %s200_s29, %s2065_s8 }
   0xd   : > { %p2073_p12 = scmp.lt.s32.totalorder %s200_s29, %s200_s29  ;;  %p2074_p13 = scmp.lt.s32.totalorder %s2065_s8, %s2065_s8 }
   0xe   : > { %p2269_p7 = pnand %p1972_p6, %p2246_p1 }
   0xf   : > { %p2075_p0 = por %p2074_p13, %p2073_p12 }
  0x10   : > { %p2067_p9 = pneg %p2269_p7 }
  0x12   : > { %p2068_p10 = pnand %p2067_p9, %p2066_p8 }
  0x14   : > { %p2069_p11 = pneg %p2068_p10 }
  0x16   : > { %p2076_p2 = pnand %p2075_p0, %p2069_p11 }
  0x18   : > { %2079 = shalt.err (!%p2076_p2)
}
  0x19   : > { %s2166_s9 = smov [#allocation7]   ;;  %s2167_s10 = smov 128  }
  0x1a   : > { %s2168_s11 = smov 8   ;;  %p29_p3 = scmp.ge.s32.totalorder %s28_s7, 2 }
  0x1b   : > { %1975 = dma.vmem_to_smem (!%p2269_p7), %s200_s29, 256, %s2166_s9, [#allocation6], %s2167_s10, %s2167_s10, %s2168_s11  }
  0x1c   : > { %s38_s12 = sadd.s32 1, %s2152_s20  ;;  %p45_p6 = scmp.ne.s32.totalorder %s2152_s20, %s2148_s19 }
  0x1d   : > { %p46_p8 = scmp.eq.s32.totalorder %s2164_s23, 0  ;;  %s3024_s7 = smov (%p29_p3, %s28_s7), 0 }
  0x1e   : > { %p1981_p10 = scmp.lt.s32.totalorder %s2164_s23, 2  ;;  %s35_s13 = ssub.s32 %s2160_s22, %s3024_s7 }
  0x1f   : > { %p47_p9 = por %p46_p8, %p45_p6  ;;  %s235_s14 = sand.u32 1, %s2152_s20  }
  0x20   : > { %p36_p11 = scmp.eq.s32.totalorder %s35_s13, 0  ;;  %s1908_s15 = sshll.u32 %s235_s14, 6 }
  0x21   : > { %s1964_s16 = sshll.u32 %s2160_s22, 10  ;;  %s239_s28 = scalar_lea.vmem [#allocation4], %s1908_s15 }
  0x22   : > { %s2293_s17 = scalar_select %p36_p11, %s2152_s20, %s38_s12  }
  0x23   : > { %s2298_s27 = scalar_lea.hbm %s3002_s0, %s1964_s16  ;;  %s246_s29 = sshll.u32 %s239_s28, 4  ;;  %s2304_s29 = int_to_ptr.vmem [resolvable:$true] %s246_s29 }
  0x24   : > { %p2300_p7 = pnand %p1981_p10, %p47_p9  ;;  %s2306_s8 = scalar_lea.sflag [#allocation5], %s235_s14 }
  0x25   : > { %s2080_s9 = scalar_lea.hbm %s2298_s27, 1024  ;;  %s2085_s15 = scalar_lea.hbm %s3002_s0, 2048 }
  0x26   : > { %p2081_p12 = scmp.ne.s32.totalorder %s2298_s27, %s2080_s9  ;;  %p2082_p13 = pneg %p2300_p7 }
  0x27   : > { %p2086_p3 = scmp.lt.u32.totalorder %s2298_s27, %s3002_s0  ;;  %p2087_p6 = scmp.lt.u32.totalorder %s2085_s15, %s2080_s9 }
  0x28   : > { %p2083_p0 = pnand %p2082_p13, %p2081_p12  ;;  %p2089_p9 = scmp.lt.u32.totalorder %s2080_s9, %s2298_s27 }
  0x29   : > { %p2088_p8 = por %p2087_p6, %p2086_p3 }
  0x2a   : > { %p2084_p2 = pneg %p2083_p0 }
  0x2b   : > { %p2090_p10 = por %p2089_p9, %p2088_p8 }
  0x2d   : > { %p2091_p11 = pnand %p2090_p10, %p2084_p2 }
  0x2f   : > { %2094 = shalt.err (!%p2091_p11)
}
  0x30   : > { %s2095_s14 = scalar_lea.vmem %s2304_s29, 1024  ;;  %s2169_s24 = smov [#allocation4]  }
  0x31   : > { %p2096_p12 = scmp.ne.s32.totalorder %s2304_s29, %s2095_s14  ;;  %s2100_s28 = sshll.u32 %s2169_s24, 4  ;;  %s2101_s28 = int_to_ptr.vmem [resolvable:$false] %s2100_s28 }
  0x32   : > { %s2102_s12 = scalar_lea.vmem %s2101_s28, 2048  ;;  %p2103_p4 = scmp.lt.s32.totalorder %s2304_s29, %s2101_s28 }
  0x33   : > { %p2098_p0 = pnand %p2096_p12, %p2082_p13  ;;  %p2104_p3 = scmp.lt.s32.totalorder %s2102_s12, %s2095_s14 }
  0x35   : > { %p2099_p1 = pneg %p2098_p0  ;;  %p2105_p6 = por %p2104_p3, %p2103_p4 }
  0x37   : > { %p2106_p8 = pnand %p2105_p6, %p2099_p1 }
  0x39   : > { %2109 = shalt.err (!%p2106_p8)
}
  0x3a   : > { %1979 = dma.hbm_to_vmem [thread:$0]  (!%p2300_p7), %s2298_s27, 1024, %s2304_s29, %s2306_s8, %s2167_s10, %s2167_s10, %s2168_s11  }
  0x3b   : > { %258 = sbr.rel (%p2261_p5) target bundleno = 968 (0x3c8), region = 40  ;;  %s260_s9 = sand.u32 (!%p2261_p5), 1, %s2148_s19  }
  0x3c   : > { %s1912_s13 = sshll.u32 (!%p2261_p5), %s260_s9, 6  ;;  %s261_s15 = scalar_lea.sflag (!%p2261_p5), [#allocation5], %s260_s9 }
  0x3d   : > { %s2340_s16 = scalar_lea.vmem (!%p2261_p5), [#allocation4], %s1912_s13  ;;  %p3016_p1 = scmp.ne.s32.totalorder (!%p2261_p5), %s3012_s26, 0 }
  0x42   : > { %2135 = dma.done.wait (%p3016_p1), %s261_s15, 1024  }
  0x43   : > { %2137 = vsyncadd (%p3016_p1), %s261_s15, 4294966272  ;;  %p3017_p4 = scmp.ne.s32.totalorder %s3011_s25, 0 }
  0x45   : > { %2139 = dma.done.wait (%p3017_p4), [#allocation6], 256  }
  0x46   : > { %2141 = vsyncadd (%p3017_p4), [#allocation6], 4294967040 }
  0x47   : > { %273 = sfence }
  0x48   : > { %p1914_p5 = scmp.ne.s32.totalorder %s2156_s21, 0 }
  0x49   : > { %vm330_vm0 = vcmask (!%p1914_p5), 162816   ;;  %vm333_vm1 = vcmask (!%p1914_p5), 158720   ;;  %v2170_v0 = vmov (!%p1914_p5), 0.0  }
  0x4a   : > { %329 = sbr.rel (%p1914_p5) target bundleno = 81 (0x51), region = 52  ;;  %331 = vst.msk [vmem:[#allocation2] sm:$0xff] (!%p1914_p5), %vm330_vm0, %v2170_v0  ;;  %332 = vst.msk [vmem:[#allocation2 + $0x8] sm:$0xff] (!%p1914_p5), %vm330_vm0, %v2170_v0 }
  0x4b   : > { %335 = vst.msk [vmem:[#allocation2 + $0x18] sm:$0xff] (!%p1914_p5), %vm330_vm0, %v2170_v0  ;;  %336 = vst.msk [vmem:[#allocation2 + $0x20] sm:$0xff] (!%p1914_p5), %vm330_vm0, %v2170_v0 }
  0x4c   : > { %338 = vst.msk [vmem:[#allocation2 + $0x30] sm:$0xff] (!%p1914_p5), %vm330_vm0, %v2170_v0  ;;  %339 = vst.msk [vmem:[#allocation2 + $0x38] sm:$0xff] (!%p1914_p5), %vm330_vm0, %v2170_v0 }
  0x4d   : > { %341 = vst.msk [vmem:[#allocation2 + $0x48] sm:$0xff] (!%p1914_p5), %vm330_vm0, %v2170_v0  ;;  %342 = vst.msk [vmem:[#allocation2 + $0x50] sm:$0xff] (!%p1914_p5), %vm330_vm0, %v2170_v0 }
  0x4e   : > { %334 = vst.msk [vmem:[#allocation2 + $0x10] sm:$0xf] (!%p1914_p5), %vm333_vm1, %v2170_v0  ;;  %337 = vst.msk [vmem:[#allocation2 + $0x28] sm:$0xf] (!%p1914_p5), %vm333_vm1, %v2170_v0 }
  0x4f   : > { %340 = vst.msk [vmem:[#allocation2 + $0x40] sm:$0xf] (!%p1914_p5), %vm333_vm1, %v2170_v0  ;;  %343 = vst.msk [vmem:[#allocation2 + $0x58] sm:$0xf] (!%p1914_p5), %vm333_vm1, %v2170_v0 }
  0x51 PF: > { %v344_v1 = vld [vmem:[%s2340_s16] sm:$0xff]  ;;  %v345_v2 = vld [vmem:[%s2340_s16 + $0x8] sm:$0xff]  ;;  %v346_v3 = vld [vmem:[%s2340_s16 + $0x10] sm:$0xff]  ;;  %v2171_v7 = vmov 0   ;;  %s2172_s25 = smov 2   ;;  %v2173_v26 = vmov 1  }
  0x52   : > { %v352_v4 = vmax.f32 %v344_v1, 0.0  ;;  %v354_v5 = vmax.f32 %v346_v3, 0.0  ;;  %v347_v6 = vld [vmem:[%s2340_s16 + $0x18] sm:$0xff]  ;;  %2051 = vset.pattern.permute.xlu1 %v2171_v7  ;;  %2050 = vset.pattern.permute.xlu0 %v2171_v7  ;;  %v353_v8 = vmax.f32 %v345_v2, 0.0  ;;  %v349_v10 = vld [vmem:[%s2340_s16 + $0x28] sm:$0xff]  ;;  %v348_v11 = vld [vmem:[%s2340_s16 + $0x20] sm:$0xff] }
  0x53   : > { %v355_v9 = vmax.f32 %v347_v6, 0.0  ;;  %v357_v12 = vmax.f32 %v349_v10, 0.0  ;;  %v356_v13 = vmax.f32 %v348_v11, 0.0  ;;  %v351_v14 = vld [vmem:[%s2340_s16 + $0x38] sm:$0xff]  ;;  %v350_v15 = vld [vmem:[%s2340_s16 + $0x30] sm:$0xff]  ;;  %v2174_v27 = vmov 2  }
  0x54   : > { %368 = vrot.lane.b32.xlu0 %v352_v4, %s2172_s25  ;;  %372 = vrot.lane.b32.xlu1 %v354_v5, %s2172_s25  ;;  %v359_v16 = vmax.f32 %v351_v14, 0.0  ;;  %v358_v17 = vmax.f32 %v350_v15, 0.0  ;;  %v2362_v18 = vld [vmem:[%s3004_s2 + $0x1] ss:$0 sm:$0xff]  ;;  %v2367_v19 = vld [vmem:[%s3004_s2] ss:$0 sm:$0xff] }
  0x55   : > { %v2374_v20 = vld [vmem:[%s3004_s2 + $0x2] ss:$0 sm:$0xff]  ;;  %v2379_v21 = vld [vmem:[%s3004_s2 + $0x3] ss:$0 sm:$0xff]  ;;  %v2386_v22 = vld [vmem:[%s3004_s2 + $0x4] ss:$0 sm:$0xff] }
  0x56   : > { %v2391_v23 = vld [vmem:[%s3004_s2 + $0x5] ss:$0 sm:$0xff]  ;;  %v2398_v24 = vld [vmem:[%s3004_s2 + $0x6] ss:$0 sm:$0xff]  ;;  %v2403_v25 = vld [vmem:[%s3004_s2 + $0x7] ss:$0 sm:$0xff] }
  0x57   : > { %vm392_vm2 = vcmask 146448   ;;  %s1915_s16 = sld [smem:[#allocation7 + $0x80]]  ;;  %s2175_s10 = smov 126   ;;  %vm1140_vm3 = vcmask 130048   ;;  %vm1174_vm4 = vcmask 1041409   ;;  %vm1177_vm5 = vcmask 1042434  }
  0x58   : > { %370 = vrot.lane.b32.xlu0 %v353_v8, %s2172_s25  ;;  %374 = vrot.lane.b32.xlu1 %v355_v9, %s2172_s25  ;;  %s2424_s26 = sld [smem:[#allocation7 + $0x200]]  ;;  %s2176_s27 = smov 124   ;;  %vm1180_vm6 = vcmask 1043459   ;;  %vm1183_vm7 = vcmask 1044484   ;;  %vm1186_vm8 = vcmask 1045509   ;;  %vm1189_vm9 = vcmask 1046534  }
  0x59   : > { %s2432_s30 = sld [smem:[#allocation7 + $0x280]]  ;;  %s1932_s6 = sld [smem:[#allocation7 + $0x81]]  ;;  %vm1192_vm10 = vcmask 1047559   ;;  %vm1232_vm11 = vcmask 261248   ;;  %vm1267_vm12 = vcmask 392448   ;;  %vm1302_vm13 = vcmask 523648  }
  0x5a   : > { %s1921_s11 = sld [smem:[#allocation7 + $0x380]]  ;;  %s1933_s8 = sld [smem:[#allocation7 + $0x101]]  ;;  %vm1337_vm14 = vcmask 654848   ;;  %vm1372_vm15 = vcmask 786048   ;;  %vm1407_vm0 = vcmask 917248   ;;  %vm1442_vm1 = vcmask 1048448  }
  0x5b   : > { %s1922_s29 = sld [smem:[#allocation7 + $0x400]]  ;;  %s1935_s18 = sld [smem:[#allocation7 + $0x201]] }
  0x5c   : > { %378 = vrot.lane.b32.xlu1 %v357_v12, %s2172_s25  ;;  %376 = vrot.lane.b32.xlu0 %v356_v13, %s2172_s25  ;;  %s1936_s14 = sld [smem:[#allocation7 + $0x281]]  ;;  %s1941_s12 = sld [smem:[#allocation7 + $0x82]] }
  0x5d   : > { %v410_v32 = vstv %s1915_s16  ;;  %s1938_s24 = sld [smem:[#allocation7 + $0x381]]  ;;  %s1942_s9 = sld [smem:[#allocation7 + $0x102]] }
  0x5e   : > { %v446_v44 = vstv %s2424_s26  ;;  %s1939_s28 = sld [smem:[#allocation7 + $0x401]]  ;;  %s1950_s13 = sld [smem:[#allocation7 + $0x83]] }
  0x5f   : > { %v460_v47 = vstv %s2432_s30  ;;  %v631_v58 = vstv %s1932_s6  ;;  %s1951_s15 = sld [smem:[#allocation7 + $0x103]]  ;;  %s1944_s16 = sld [smem:[#allocation7 + $0x202]] }
  0x60   : > { %382 = vrot.lane.b32.xlu1 %v359_v16, %s2172_s25  ;;  %380 = vrot.lane.b32.xlu0 %v358_v17, %s2172_s25  ;;  %s2420_s25 = sld [smem:[#allocation7 + $0x100]]  ;;  %v482_v52 = vstv %s1921_s11  ;;  %v645_v62 = vstv %s1933_s8  ;;  %s1953_s26 = sld [smem:[#allocation7 + $0x203]] }
  0x61   : > { %v496_v55 = vstv %s1922_s29  ;;  %v667_v4 = vstv %s1935_s18  ;;  %s1954_s30 = sld [smem:[#allocation7 + $0x283]]  ;;  %s1947_s11 = sld [smem:[#allocation7 + $0x382]] }
  0x62   : > { %v681_v7 = vstv %s1936_s14  ;;  %s2564_s29 = sld [smem:[#allocation7 + $0x402]]  ;;  %s2582_s6 = sld [smem:[#allocation7 + $0x383]] }
  0x63   : > { %v703_v12 = vstv %s1938_s24  ;;  %s403_s8 = sld [smem:[#allocation7]]  ;;  %s2609_s18 = sld [smem:[#allocation7 + $0x403]] }
  0x64   : > { %562 = vperm.xlu1 %2051, %v2362_v18   ;;  %558 = vperm.xlu0 %2050, %v2367_v19   ;;  %v717_v16 = vstv %s1939_s28  ;;  %s2617_s14 = sld [smem:[#allocation7 + $0x180]]  ;;  %s1931_s28 = sld [smem:[#allocation7 + $0x1]] }
  0x65   : > { %s2631_s24 = sld [smem:[#allocation7 + $0x300]]  ;;  %p1960_p7 = scmp.ne.s32.totalorder %s2156_s21, 1 }
  0x66   : > { %v424_v37 = vstv %s2420_s25  ;;  %s1945_s25 = sld [smem:[#allocation7 + $0x282]] }
  0x68   : > { %566 = vperm.xlu1 %2051, %v2374_v20   ;;  %570 = vperm.xlu0 %2050, %v2379_v21  }
  0x6c   : > { %574 = vperm.xlu1 %2051, %v2386_v22   ;;  %578 = vperm.xlu0 %2050, %v2391_v23  }
  0x70   : > { %582 = vperm.xlu1 %2051, %v2398_v24   ;;  %586 = vperm.xlu0 %2050, %v2403_v25  }
  0x74   : > { %2052 = vset.pattern.permute.xlu1 %v2173_v26  ;;  %2053 = vset.pattern.permute.xlu0 %v2173_v26 }
  0x75   : > { %731 = vperm.xlu1 %2052, %v2367_v19   ;;  %735 = vperm.xlu0 %2053, %v2362_v18  }
  0x79   : > { %739 = vperm.xlu1 %2052, %v2374_v20   ;;  %751 = vperm.xlu0 %2053, %v2391_v23  }
  0x7d   : > { %743 = vperm.xlu1 %2052, %v2379_v21   ;;  %2055 = vset.pattern.permute.xlu0 %v2174_v27 }
  0x81   : > { %747 = vperm.xlu1 %2052, %v2386_v22  }
  0x85   : > { %2054 = vset.pattern.permute.xlu1 %v2174_v27 }
  0x86   : > { %912 = vperm.xlu1 %2054, %v2374_v20  }
  0xc6   : > { %v369_v28 = vpop.permute.xlu0 %368  ;;  %v373_v29 = vpop.permute.xlu1 %372 }
  0xc7   : > { %393 = vst.msk [vmem:[#allocation2 + $0x2] sm:$0xff] %vm392_vm2, %v369_v28  ;;  %395 = vst.msk [vmem:[#allocation2 + $0x1a] sm:$0xff] %vm392_vm2, %v373_v29  ;;  %v804_v28 = vstv %s1941_s12  ;;  %s1937_s12 = sld [smem:[#allocation7 + $0x301]] }
  0xca   : > { %v371_v30 = vpop.permute.xlu0 %370  ;;  %v375_v31 = vpop.permute.xlu1 %374 }
  0xcb   : > { %394 = vst.msk [vmem:[#allocation2 + $0xa] sm:$0xff] %vm392_vm2, %v371_v30  ;;  %396 = vst.msk [vmem:[#allocation2 + $0x22] sm:$0xff] %vm392_vm2, %v375_v31 }
  0xce   : > { %v2426_v33 = vld [vmem:[#allocation2] sm:$0xff]  ;;  %v379_v34 = vpop.permute.xlu1 %378  ;;  %v377_v35 = vpop.permute.xlu0 %376  ;;  %v2472_v63 = vld [vmem:[#allocation2 + $0x18] sm:$0xff] }
  0xcf   : > { %v411_v36 = vmul.f32 %v410_v32, %v2426_v33  ;;  %398 = vst.msk [vmem:[#allocation2 + $0x3a] sm:$0xff] %vm392_vm2, %v379_v34  ;;  %397 = vst.msk [vmem:[#allocation2 + $0x32] sm:$0xff] %vm392_vm2, %v377_v35  ;;  %v425_v41 = vmul.f32 %v424_v37, %v2426_v33  ;;  %v2441_v43 = vld [vmem:[#allocation2 + $0x2] sm:$0xff]  ;;  %v632_v2 = vmul.f32 %v631_v58, %v2472_v63  ;;  %v2485_v8 = vld [vmem:[#allocation2 + $0x1a] sm:$0xff] }
  0xd0   : > { %v447_v45 = vmul.f32 %v446_v44, %v2441_v43  ;;  %v461_v49 = vmul.f32 %v460_v47, %v2441_v43  ;;  %v646_v6 = vmul.f32 %v645_v62, %v2472_v63  ;;  %v668_v11 = vmul.f32 %v667_v4, %v2485_v8 }
  0xd1   : > { %415 = vrot.lane.b32.xlu0 %v411_v36, %s2175_s10  ;;  %v682_v14 = vmul.f32 %v681_v7, %v2485_v8 }
  0xd2   : > { %v2435_v38 = vld [vmem:[#allocation2 + $0x8] sm:$0xff]  ;;  %v383_v39 = vpop.permute.xlu1 %382  ;;  %v381_v40 = vpop.permute.xlu0 %380  ;;  %v2465_v57 = vld [vmem:[#allocation2 + $0x20] sm:$0xff] }
  0xd3   : > { %v412_v42 = vmul.f32 %v410_v32, %v2435_v38  ;;  %400 = vst.msk [vmem:[#allocation2 + $0x52] sm:$0xff] %vm392_vm2, %v383_v39  ;;  %399 = vst.msk [vmem:[#allocation2 + $0x4a] sm:$0xff] %vm392_vm2, %v381_v40  ;;  %v426_v46 = vmul.f32 %v424_v37, %v2435_v38  ;;  %v2449_v48 = vld [vmem:[#allocation2 + $0xa] sm:$0xff]  ;;  %v633_v61 = vmul.f32 %v631_v58, %v2465_v57  ;;  %v2479_v3 = vld [vmem:[#allocation2 + $0x22] sm:$0xff]  ;;  %v818_v32 = vstv %s1942_s9  ;;  %s2658_s9 = sld [smem:[#allocation7 + $0x3]] }
  0xd4   : > { %v448_v50 = vmul.f32 %v446_v44, %v2449_v48  ;;  %v2455_v51 = vld [vmem:[#allocation2 + $0x4] sm:$0xff]  ;;  %v462_v54 = vmul.f32 %v460_v47, %v2449_v48  ;;  %v2461_v56 = vld [vmem:[#allocation2 + $0xc] sm:$0xff]  ;;  %v647_v1 = vmul.f32 %v645_v62, %v2465_v57  ;;  %v669_v5 = vmul.f32 %v667_v4, %v2479_v3  ;;  %v2497_v15 = vld [vmem:[#allocation2 + $0x1c] sm:$0xff] }
  0xd5   : > { %429 = vrot.lane.b32.xlu0 %v425_v41, %s2176_s27  ;;  %417 = vrot.lane.b32.xlu1 %v412_v42, %s2175_s10  ;;  %v483_v53 = vmul.f32 %v482_v52, %v2455_v51  ;;  %v497_v59 = vmul.f32 %v496_v55, %v2455_v51  ;;  %v484_v60 = vmul.f32 %v482_v52, %v2461_v56  ;;  %v2490_v10 = vld [vmem:[#allocation2 + $0x24] sm:$0xff]  ;;  %v977_v40 = vstv %s1950_s13  ;;  %s2660_s13 = sld [smem:[#allocation7 + $0x182]] }
  0xd6   : > { %v498_v0 = vmul.f32 %v496_v55, %v2461_v56  ;;  %v683_v9 = vmul.f32 %v681_v7, %v2479_v3  ;;  %v705_v13 = vmul.f32 %v703_v12, %v2490_v10  ;;  %v2501_v17 = vld [vmem:[#allocation2 + $0x38] sm:$0xff]  ;;  %v719_v29 = vmul.f32 %v717_v16, %v2490_v10  ;;  %v2508_v34 = vld [vmem:[#allocation2 + $0x30] sm:$0xff] }
  0xd7   : > { %v704_v30 = vmul.f32 %v703_v12, %v2497_v15  ;;  %v806_v31 = vmul.f32 %v804_v28, %v2501_v17  ;;  %v718_v35 = vmul.f32 %v717_v16, %v2497_v15  ;;  %v820_v36 = vmul.f32 %v818_v32, %v2501_v17 }
  0xd8   : > { %v805_v37 = vmul.f32 %v804_v28, %v2508_v34  ;;  %v991_v42 = vstv %s1951_s15  ;;  %v854_v58 = vstv %s1945_s25  ;;  %v1013_v62 = vstv %s1953_s26  ;;  %s2727_s15 = sld [smem:[#allocation7 + $0x183]]  ;;  %s2178_s26 = smov 16  }
  0xd9   : > { %451 = vrot.lane.b32.xlu0 %v447_v45, %s2175_s10  ;;  %431 = vrot.lane.b32.xlu1 %v426_v46, %s2176_s27  ;;  %v819_v45 = vmul.f32 %v818_v32, %v2508_v34  ;;  %s1955_s25 = sld [smem:[#allocation7 + $0x303]] }
  0xda   : > { %v2515_v39 = vld [vmem:[#allocation2 + $0x50] sm:$0xff]  ;;  %v2520_v44 = vld [vmem:[#allocation2 + $0x48] sm:$0xff] }
  0xdb   : > { %v979_v41 = vmul.f32 %v977_v40, %v2515_v39  ;;  %v993_v46 = vmul.f32 %v991_v42, %v2515_v39  ;;  %v978_v47 = vmul.f32 %v977_v40, %v2520_v44  ;;  %v2549_v4 = vld [vmem:[#allocation2 + $0x4a] sm:$0xff] }
  0xdc   : > { %v1014_v7 = vmul.f32 %v1013_v62, %v2549_v4 }
  0xdd   : > { %465 = vrot.lane.b32.xlu0 %v461_v49, %s2176_s27  ;;  %453 = vrot.lane.b32.xlu1 %v448_v50, %s2175_s10  ;;  %v2527_v49 = vld [vmem:[#allocation2 + $0x3a] sm:$0xff]  ;;  %v840_v50 = vstv %s1944_s16  ;;  %s1946_s16 = sld [smem:[#allocation7 + $0x302]] }
  0xde   : > { %v842_v52 = vmul.f32 %v840_v50, %v2527_v49 }
  0xe1   : > { %487 = vrot.lane.b32.xlu0 %v483_v53, %s2175_s10  ;;  %467 = vrot.lane.b32.xlu1 %v462_v54, %s2176_s27  ;;  %v992_v53 = vmul.f32 %v991_v42, %v2520_v44  ;;  %v2533_v54 = vld [vmem:[#allocation2 + $0x32] sm:$0xff] }
  0xe3   : > { %v2537_v55 = vpop.permute.xlu1 %562  ;;  %v2560_v12 = vpop.permute.xlu0 %558 }
  0xe5   : > { %501 = vrot.lane.b32.xlu0 %v497_v59, %s2176_s27  ;;  %489 = vrot.lane.b32.xlu1 %v484_v60, %s2175_s10  ;;  %v2539_v59 = vld [vmem:[#allocation2 + $0x52] sm:$0xff]  ;;  %v856_v60 = vmul.f32 %v854_v58, %v2527_v49 }
  0xe9   : > { %638 = vrot.lane.b32.xlu0 %v633_v61, %s2175_s10  ;;  %503 = vrot.lane.b32.xlu1 %v498_v0, %s2176_s27  ;;  %v841_v61 = vmul.f32 %v840_v50, %v2533_v54  ;;  %v1015_v0 = vmul.f32 %v1013_v62, %v2539_v59 }
  0xed   : > { %652 = vrot.lane.b32.xlu0 %v647_v1, %s2176_s27  ;;  %636 = vrot.lane.b32.xlu1 %v632_v2, %s2175_s10  ;;  %v855_v1 = vmul.f32 %v854_v58, %v2533_v54  ;;  %v2547_v2 = vpop.permute.xlu1 %566  ;;  %v404_v58 = vstv %s403_s8  ;;  %s2183_s8 = smov 96  }
  0xee   : > { %v405_v62 = vmul.f32 %v404_v58, %v2426_v33 }
  0xf1   : > { %674 = vrot.lane.b32.xlu0 %v669_v5, %s2175_s10  ;;  %650 = vrot.lane.b32.xlu1 %v646_v6, %s2176_s27  ;;  %v1027_v5 = vstv %s1954_s30  ;;  %s2179_s30 = smov 32  }
  0xf2   : > { %v1028_v6 = vmul.f32 %v1027_v5, %v2549_v4 }
  0xf5   : > { %688 = vrot.lane.b32.xlu0 %v683_v9, %s2176_s27  ;;  %672 = vrot.lane.b32.xlu1 %v668_v11, %s2175_s10  ;;  %v2557_v9 = vpop.permute.xlu1 %574  ;;  %v1029_v11 = vmul.f32 %v1027_v5, %v2539_v59 }
  0xf9   : > { %710 = vrot.lane.b32.xlu0 %v705_v13, %s2175_s10  ;;  %686 = vrot.lane.b32.xlu1 %v682_v14, %s2176_s27  ;;  %v2562_v13 = vld [vmem:[#allocation2 + $0x3c] sm:$0xff]  ;;  %v876_v14 = vstv %s1947_s11  ;;  %v2569_v28 = vpop.permute.xlu1 %582  ;;  %s2180_s11 = smov 48  }
  0xfa   : > { %v878_v16 = vmul.f32 %v876_v14, %v2562_v13 }
  0xfd   : > { %724 = vrot.lane.b32.xlu0 %v719_v29, %s2176_s27  ;;  %708 = vrot.lane.b32.xlu1 %v704_v30, %s2175_s10  ;;  %v2573_v29 = vpop.permute.xlu0 %570  ;;  %v2575_v30 = vld [vmem:[#allocation2 + $0x34] sm:$0xff]  ;;  %v2580_v32 = vpop.permute.xlu1 %731 }
  0xfe   : > { %v877_v40 = vmul.f32 %v876_v14, %v2575_v30 }
 0x101   : > { %722 = vrot.lane.b32.xlu1 %v718_v35, %s2176_s27  ;;  %811 = vrot.lane.b32.xlu0 %v806_v31, %s2175_s10  ;;  %v890_v31 = vstv %s2564_s29  ;;  %s2181_s29 = smov 64  }
 0x102   : > { %v891_v35 = vmul.f32 %v890_v31, %v2575_v30 }
 0x105   : > { %825 = vrot.lane.b32.xlu0 %v820_v36, %s2176_s27  ;;  %809 = vrot.lane.b32.xlu1 %v805_v37, %s2175_s10  ;;  %v2585_v36 = vpop.permute.xlu0 %578  ;;  %v2590_v37 = vpop.permute.xlu1 %739 }
 0x109   : > { %823 = vrot.lane.b32.xlu1 %v819_v45, %s2176_s27  ;;  %984 = vrot.lane.b32.xlu0 %v979_v41, %s2175_s10  ;;  %v2593_v41 = vld [vmem:[#allocation2 + $0x54] sm:$0xff]  ;;  %v2596_v42 = vpop.permute.xlu0 %586  ;;  %v1049_v45 = vstv %s2582_s6  ;;  %s2182_s6 = smov 80  }
 0x10d   : > { %998 = vrot.lane.b32.xlu0 %v993_v46, %s2176_s27  ;;  %982 = vrot.lane.b32.xlu1 %v978_v47, %s2175_s10  ;;  %v1051_v46 = vmul.f32 %v1049_v45, %v2593_v41  ;;  %v2603_v47 = vpop.permute.xlu1 %743  ;;  %v2606_v50 = vpop.permute.xlu0 %735 }
 0x111   : > { %847 = vrot.lane.b32.xlu0 %v842_v52, %s2175_s10  ;;  %996 = vrot.lane.b32.xlu1 %v992_v53, %s2176_s27  ;;  %v2613_v52 = vpop.permute.xlu1 %747  ;;  %v2615_v53 = vpop.permute.xlu0 %751 }
 0x115   : > { %861 = vrot.lane.b32.xlu0 %v856_v60, %s2176_s27  ;;  %845 = vrot.lane.b32.xlu1 %v841_v61, %s2175_s10  ;;  %v2621_v60 = vpop.permute.xlu1 %912  ;;  %v1063_v61 = vstv %s2609_s18  ;;  %s2184_s18 = smov 112  }
 0x119   : > { %1020 = vrot.lane.b32.xlu0 %v1015_v0, %s2175_s10  ;;  %859 = vrot.lane.b32.xlu1 %v855_v1, %s2176_s27 }
 0x11d   : > { %1032 = vrot.lane.b32.xlu0 %v1028_v6, %s2176_s27  ;;  %1018 = vrot.lane.b32.xlu1 %v1014_v7, %s2175_s10  ;;  %v892_v6 = vmul.f32 %v890_v31, %v2562_v13 }
 0x121   : > { %908 = vperm.xlu0 %2055, %v2362_v18   ;;  %1034 = vrot.lane.b32.xlu1 %v1029_v11, %s2176_s27 }
 0x125   : > { %883 = vrot.lane.b32.xlu0 %v878_v16, %s2175_s10  ;;  %904 = vperm.xlu1 %2054, %v2367_v19  }
 0x129   : > { %924 = vperm.xlu0 %2055, %v2391_v23   ;;  %916 = vperm.xlu1 %2054, %v2379_v21  }
 0x12d   : > { %895 = vrot.lane.b32.xlu0 %v891_v35, %s2176_s27  ;;  %2056 = vset.pattern.permute.xlu1 %v2173_v26 }
 0x12e   : > { %755 = vperm.xlu1 %2056, %v2398_v24  }
 0x131   : > { %928 = vperm.xlu0 %2055, %v2398_v24  }
 0x132   : > { %881 = vrot.lane.b32.xlu1 %v877_v40, %s2175_s10 }
 0x133   : > { %2057 = vset.pattern.permute.xlu1 %v2174_v27  ;;  %v2177_v27 = vmov 3  }
 0x135   : > { %1056 = vrot.lane.b32.xlu0 %v1051_v46, %s2175_s10 }
 0x136   : > { %920 = vperm.xlu1 %2057, %v2386_v22  }
 0x139   : > { %932 = vperm.xlu0 %2055, %v2403_v25  }
 0x13a   : > { %2058 = vset.pattern.permute.xlu1 %v2173_v26  ;;  %v2623_v26 = vld [vmem:[#allocation2 + $0x4c] sm:$0xff] }
 0x13b   : > { %759 = vperm.xlu1 %2058, %v2403_v25   ;;  %v1064_v5 = vmul.f32 %v1063_v61, %v2623_v26  ;;  %v1050_v16 = vmul.f32 %v1049_v45, %v2623_v26 }
 0x13d   : > { %2060 = vset.pattern.permute.xlu0 %v2177_v27 }
 0x13e   : > { %1081 = vperm.xlu0 %2060, %v2362_v18   ;;  %v440_v18 = vstv %s2617_s14  ;;  %s1965_s14 = sshll.u32 %s2156_s21, 4 }
 0x13f   : > { %2059 = vset.pattern.permute.xlu1 %v2177_v27  ;;  %v442_v31 = vmul.f32 %v440_v18, %v2449_v48  ;;  %v476_v27 = vstv %s2631_s24 }
 0x140   : > { %1077 = vperm.xlu1 %2059, %v2367_v19   ;;  %v406_v19 = vmul.f32 %v404_v58, %v2435_v38  ;;  %v477_v45 = vmul.f32 %v476_v27, %v2455_v51  ;;  %v478_v48 = vmul.f32 %v476_v27, %v2461_v56 }
 0x142   : > { %1085 = vperm.xlu0 %2060, %v2374_v20  }
 0x143   : > { %v416_v0 = vpop.permute.xlu0 %415 }
 0x144   : > { %v421_v1 = vadd.f32 %v416_v0, %v405_v62  ;;  %1089 = vperm.xlu1 %2059, %v2379_v21   ;;  %v441_v21 = vmul.f32 %v440_v18, %v2441_v43 }
 0x146   : > { %1068 = vrot.lane.b32.xlu0 %v1064_v5, %s2176_s27 }
 0x147   : > { %v418_v7 = vpop.permute.xlu1 %417  ;;  %v430_v20 = vpop.permute.xlu0 %429 }
 0x148   : > { %v422_v11 = vadd.f32 %v418_v7, %v406_v19  ;;  %v435_v33 = vadd.f32 %v430_v20, %v421_v1  ;;  %897 = vrot.lane.b32.xlu1 %v892_v6, %s2176_s27  ;;  %v1065_v20 = vmul.f32 %v1063_v61, %v2593_v41 }
 0x14a   : > { %v443_v14 = vadd.f32 %v441_v21, %v435_v33  ;;  %1101 = vperm.xlu0 %2060, %v2398_v24   ;;  %v625_v21 = vstv %s1931_s28 }
 0x14b   : > { %v432_v35 = vpop.permute.xlu1 %431  ;;  %v452_v40 = vpop.permute.xlu0 %451  ;;  %v627_v51 = vmul.f32 %v625_v21, %v2465_v57  ;;  %v626_v56 = vmul.f32 %v625_v21, %v2472_v63  ;;  %v697_v63 = vstv %s1937_s12 }
 0x14c   : > { %v436_v46 = vadd.f32 %v432_v35, %v422_v11  ;;  %v457_v38 = vadd.f32 %v452_v40, %v443_v14  ;;  %1054 = vrot.lane.b32.xlu1 %v1050_v16, %s2175_s10  ;;  %s1934_s10 = sld [smem:[#allocation7 + $0x181]] }
 0x14e   : > { %v444_v58 = vadd.f32 %v442_v31, %v436_v46 }
 0x14f   : > { %v454_v62 = vpop.permute.xlu1 %453  ;;  %v466_v0 = vpop.permute.xlu0 %465 }
 0x150   : > { %v458_v1 = vadd.f32 %v454_v62, %v444_v58  ;;  %v471_v43 = vadd.f32 %v466_v0, %v457_v38  ;;  %1093 = vperm.xlu1 %2059, %v2386_v22  }
 0x152   : > { %v479_v24 = vadd.f32 %v477_v45, %v471_v43  ;;  %v661_v38 = vstv %s1934_s10  ;;  %s2924_s10 = scalar_lea.vmem %s3007_s5, %s1965_s14 }
 0x153   : > { %v468_v5 = vpop.permute.xlu1 %467  ;;  %v488_v19 = vpop.permute.xlu0 %487  ;;  %v663_v58 = vmul.f32 %v661_v38, %v2479_v3  ;;  %v662_v45 = vmul.f32 %v661_v38, %v2485_v8 }
 0x154   : > { %v472_v6 = vadd.f32 %v468_v5, %v458_v1  ;;  %v493_v7 = vadd.f32 %v488_v19, %v479_v24  ;;  %1097 = vperm.xlu1 %2059, %v2391_v23  }
 0x156   : > { %v480_v18 = vadd.f32 %v478_v48, %v472_v6  ;;  %v699_v6 = vmul.f32 %v697_v63, %v2490_v10 }
 0x157   : > { %v490_v11 = vpop.permute.xlu1 %489  ;;  %v502_v33 = vpop.permute.xlu0 %501 }
 0x158   : > { %v494_v14 = vadd.f32 %v490_v11, %v480_v18  ;;  %v2648_v22 = vadd.f32 %v502_v33, %v493_v7  ;;  %1070 = vrot.lane.b32.xlu1 %v1065_v20, %s2176_s27  ;;  %s1940_s27 = sld [smem:[#allocation7 + $0x2]]  ;;  %v698_v11 = vmul.f32 %v697_v63, %v2497_v15 }
 0x15a   : > { %v589_v10 = vmul.f32 %v2560_v12, %v2648_v22 }
 0x15b   : > { %v504_v16 = vpop.permute.xlu1 %503  ;;  %v639_v35 = vpop.permute.xlu0 %638 }
 0x15c   : > { %v2652_v40 = vadd.f32 %v504_v16, %v494_v14  ;;  %v643_v23 = vadd.f32 %v639_v35, %v627_v51  ;;  %1105 = vperm.xlu1 %2059, %v2403_v25  }
 0x15e   : > { %v798_v33 = vstv %s1940_s27  ;;  %v590_v15 = vmul.f32 %v2560_v12, %v2652_v40 }
 0x15f   : > { %v637_v61 = vpop.permute.xlu1 %636  ;;  %v653_v46 = vpop.permute.xlu0 %652  ;;  %v800_v16 = vmul.f32 %v798_v33, %v2501_v17  ;;  %v799_v35 = vmul.f32 %v798_v33, %v2508_v34  ;;  %v594_v17 = vmul.f32 %v2547_v2, %v2652_v40  ;;  %v596_v34 = vmul.f32 %v2573_v29, %v2652_v40 }
 0x160   : > { %v642_v31 = vadd.f32 %v637_v61, %v626_v56  ;;  %v657_v27 = vadd.f32 %v653_v46, %v643_v23  ;;  %v971_v23 = vstv %s2658_s9  ;;  %v834_v56 = vstv %s2660_s13 }
 0x161   : > { %v836_v38 = vmul.f32 %v834_v56, %v2527_v49 }
 0x162   : > { %v665_v62 = vadd.f32 %v663_v58, %v657_v27 }
 0x163   : > { %v651_v0 = vpop.permute.xlu1 %650  ;;  %v675_v57 = vpop.permute.xlu0 %674 }
 0x164   : > { %v656_v1 = vadd.f32 %v651_v0, %v642_v31  ;;  %v679_v43 = vadd.f32 %v675_v57, %v665_v62  ;;  %v592_v31 = vmul.f32 %v2537_v55, %v2652_v40  ;;  %v598_v62 = vmul.f32 %v2557_v9, %v2652_v40 }
 0x165   : > { %v600_v0 = vmul.f32 %v2585_v36, %v2652_v40 }
 0x166   : > { %v664_v24 = vadd.f32 %v662_v45, %v656_v1 }
 0x167   : > { %v673_v25 = vpop.permute.xlu1 %672  ;;  %v689_v5 = vpop.permute.xlu0 %688 }
 0x168   : > { %v678_v19 = vadd.f32 %v673_v25, %v664_v24  ;;  %v693_v3 = vadd.f32 %v689_v5, %v679_v43 }
 0x16a   : > { %v701_v7 = vadd.f32 %v699_v6, %v693_v3 }
 0x16b   : > { %v687_v48 = vpop.permute.xlu1 %686  ;;  %v711_v18 = vpop.permute.xlu0 %710 }
 0x16c   : > { %v692_v20 = vadd.f32 %v687_v48, %v678_v19  ;;  %v715_v8 = vadd.f32 %v711_v18, %v701_v7  ;;  %v591_v19 = vmul.f32 %v2537_v55, %v2648_v22  ;;  %v593_v48 = vmul.f32 %v2547_v2, %v2648_v22 }
 0x16d   : > { %v595_v18 = vmul.f32 %v2573_v29, %v2648_v22 }
 0x16e   : > { %v700_v21 = vadd.f32 %v698_v11, %v692_v20 }
 0x16f   : > { %v709_v14 = vpop.permute.xlu1 %708  ;;  %v725_v51 = vpop.permute.xlu0 %724 }
 0x170   : > { %v714_v61 = vadd.f32 %v709_v14, %v700_v21  ;;  %v2670_v46 = vadd.f32 %v725_v51, %v715_v8  ;;  %v597_v8 = vmul.f32 %v2557_v9, %v2648_v22 }
 0x172   : > { %v763_v27 = vmul.f32 %v2580_v32, %v2670_v46  ;;  %v765_v58 = vmul.f32 %v2606_v50, %v2670_v46  ;;  %v767_v49 = vmul.f32 %v2590_v37, %v2670_v46  ;;  %v769_v12 = vmul.f32 %v2603_v47, %v2670_v46 }
 0x173   : > { %v771_v57 = vmul.f32 %v2613_v52, %v2670_v46  ;;  %v773_v1 = vmul.f32 %v2615_v53, %v2670_v46  ;;  %v723_v43 = vpop.permute.xlu1 %722  ;;  %v812_v45 = vpop.permute.xlu0 %811 }
 0x174   : > { %v2697_v24 = vadd.f32 %v763_v27, %v590_v15  ;;  %v2699_v25 = vadd.f32 %v765_v58, %v592_v31  ;;  %v2701_v5 = vadd.f32 %v767_v49, %v594_v17  ;;  %v2703_v63 = vadd.f32 %v769_v12, %v596_v34 }
 0x175   : > { %v2707_v3 = vadd.f32 %v771_v57, %v598_v62  ;;  %v2709_v6 = vadd.f32 %v773_v1, %v600_v0  ;;  %v2711_v7 = vadd.f32 %v723_v43, %v714_v61  ;;  %v816_v20 = vadd.f32 %v812_v45, %v800_v16 }
 0x176   : > { %v1007_v62 = vstv %s2727_s15 }
 0x177   : > { %v762_v11 = vmul.f32 %v2580_v32, %v2711_v7  ;;  %v764_v55 = vmul.f32 %v2606_v50, %v2711_v7  ;;  %v766_v33 = vmul.f32 %v2590_v37, %v2711_v7  ;;  %v768_v21 = vmul.f32 %v2603_v47, %v2711_v7  ;;  %v810_v2 = vpop.permute.xlu1 %809  ;;  %v826_v14 = vpop.permute.xlu0 %825 }
 0x178   : > { %v830_v29 = vadd.f32 %v826_v14, %v816_v20  ;;  %v770_v9 = vmul.f32 %v2613_v52, %v2711_v7  ;;  %v599_v32 = vmul.f32 %v2585_v36, %v2648_v22  ;;  %v772_v50 = vmul.f32 %v2615_v53, %v2711_v7 }
 0x179   : > { %v2735_v51 = vadd.f32 %v762_v11, %v589_v10  ;;  %v2737_v37 = vadd.f32 %v764_v55, %v591_v19  ;;  %v2739_v47 = vadd.f32 %v766_v33, %v593_v48  ;;  %v2741_v16 = vadd.f32 %v768_v21, %v595_v18 }
 0x17a   : > { %v815_v61 = vadd.f32 %v810_v2, %v799_v35  ;;  %v838_v15 = vadd.f32 %v836_v38, %v830_v29  ;;  %v2743_v31 = vadd.f32 %v770_v9, %v597_v8  ;;  %v2745_v52 = vadd.f32 %v772_v50, %v599_v32 }
 0x17b   : > { %v824_v17 = vpop.permute.xlu1 %823  ;;  %v985_v36 = vpop.permute.xlu0 %984  ;;  %v973_v53 = vmul.f32 %v971_v23, %v2515_v39  ;;  %v835_v10 = vmul.f32 %v834_v56, %v2533_v54  ;;  %v972_v35 = vmul.f32 %v971_v23, %v2520_v44  ;;  %v1009_v0 = vmul.f32 %v1007_v62, %v2539_v59 }
 0x17c   : > { %v829_v34 = vadd.f32 %v824_v17, %v815_v61  ;;  %v1008_v39 = vmul.f32 %v1007_v62, %v2549_v4  ;;  %v870_v20 = vstv %s1946_s16  ;;  %v1043_v4 = vstv %s1955_s25 }
 0x17d   : > { %v989_v27 = vadd.f32 %v985_v36, %v973_v53  ;;  %v872_v11 = vmul.f32 %v870_v20, %v2562_v13  ;;  %v871_v21 = vmul.f32 %v870_v20, %v2575_v30  ;;  %v1044_v61 = vmul.f32 %v1043_v4, %v2623_v26 }
 0x17e   : > { %v837_v58 = vadd.f32 %v835_v10, %v829_v34  ;;  %v1045_v13 = vmul.f32 %v1043_v4, %v2593_v41  ;;  %v602_v62 = vmul.f32 %v2569_v28, %v2652_v40  ;;  %v601_v26 = vmul.f32 %v2569_v28, %v2648_v22 }
 0x17f   : > { %v983_v49 = vpop.permute.xlu1 %982  ;;  %v999_v12 = vpop.permute.xlu0 %998 }
 0x180   : > { %v1003_v38 = vadd.f32 %v999_v12, %v989_v27  ;;  %v988_v57 = vadd.f32 %v983_v49, %v972_v35 }
 0x182   : > { %v1011_v1 = vadd.f32 %v1009_v0, %v1003_v38 }
 0x183   : > { %v997_v43 = vpop.permute.xlu1 %996  ;;  %v848_v45 = vpop.permute.xlu0 %847 }
 0x184   : > { %v1002_v19 = vadd.f32 %v997_v43, %v988_v57  ;;  %v852_v48 = vadd.f32 %v848_v45, %v838_v15 }
 0x186   : > { %v1010_v54 = vadd.f32 %v1008_v39, %v1002_v19 }
 0x187   : > { %v846_v56 = vpop.permute.xlu1 %845  ;;  %v862_v18 = vpop.permute.xlu0 %861 }
 0x188   : > { %v866_v8 = vadd.f32 %v862_v18, %v852_v48  ;;  %v851_v44 = vadd.f32 %v846_v56, %v837_v58 }
 0x18a   : > { %v2754_v23 = vadd.f32 %v872_v11, %v866_v8 }
 0x18b   : > { %v860_v59 = vpop.permute.xlu1 %859  ;;  %v1021_v55 = vpop.permute.xlu0 %1020 }
 0x18c   : > { %v865_v33 = vadd.f32 %v860_v59, %v851_v44  ;;  %v1025_v32 = vadd.f32 %v1021_v55, %v1011_v1 }
 0x18e   : > { %v873_v2 = vadd.f32 %v871_v21, %v865_v33 }
 0x18f   : > { %v1019_v14 = vpop.permute.xlu1 %1018  ;;  %v1033_v9 = vpop.permute.xlu0 %1032 }
 0x190   : > { %v1024_v29 = vadd.f32 %v1019_v14, %v1010_v54 }
 0x192   : > { %v1038_v50 = vadd.f32 %v1033_v9, %v1024_v29  ;;  %v603_v29 = vmul.f32 %v2596_v42, %v2648_v22  ;;  %v604_v9 = vmul.f32 %v2596_v42, %v2652_v40 }
 0x193   : > { %v1035_v15 = vpop.permute.xlu1 %1034 }
 0x194   : > { %v1039_v17 = vadd.f32 %v1035_v15, %v1025_v32  ;;  %v2759_v36 = vadd.f32 %v1044_v61, %v1038_v50 }
 0x196   : > { %v2761_v34 = vadd.f32 %v1045_v13, %v1039_v17 }
 0x1a0   : > { %v909_v53 = vpop.permute.xlu0 %908 }
 0x1a4   : > { %v905_v10 = vpop.permute.xlu1 %904  ;;  %v884_v30 = vpop.permute.xlu0 %883 }
 0x1a5   : > { %v888_v17 = vadd.f32 %v884_v30, %v2754_v23 }
 0x1a8   : > { %v917_v27 = vpop.permute.xlu1 %916  ;;  %v925_v58 = vpop.permute.xlu0 %924 }
 0x1ac   : > { %v896_v49 = vpop.permute.xlu0 %895 }
 0x1ad   : > { %v756_v12 = vpop.permute.xlu1 %755 }
 0x1ae   : > { %v774_v35 = vmul.f32 %v756_v12, %v2711_v7  ;;  %v775_v41 = vmul.f32 %v756_v12, %v2670_v46 }
 0x1b0   : > { %v790_v38 = vadd.f32 %v774_v35, %v601_v26  ;;  %v791_v0 = vadd.f32 %v775_v41, %v602_v62  ;;  %v929_v57 = vpop.permute.xlu0 %928 }
 0x1b1   : > { %v882_v1 = vpop.permute.xlu1 %881 }
 0x1b2   : > { %v887_v43 = vadd.f32 %v882_v1, %v873_v2 }
 0x1b4   : > { %v901_v45 = vadd.f32 %v896_v49, %v887_v43  ;;  %v2769_v19 = vpop.permute.xlu0 %1056 }
 0x1b5   : > { %v921_v39 = vpop.permute.xlu1 %920 }
 0x1b6   : > { %v935_v48 = vmul.f32 %v905_v10, %v901_v45  ;;  %v937_v54 = vmul.f32 %v909_v53, %v901_v45  ;;  %v939_v56 = vmul.f32 %v2621_v60, %v901_v45  ;;  %v941_v18 = vmul.f32 %v917_v27, %v901_v45 }
 0x1b7   : > { %v943_v20 = vmul.f32 %v921_v39, %v901_v45  ;;  %v947_v28 = vmul.f32 %v929_v57, %v901_v45  ;;  %v945_v8 = vmul.f32 %v925_v58, %v901_v45 }
 0x1b8   : > { %v951_v11 = vadd.f32 %v935_v48, %v2735_v51  ;;  %v953_v44 = vadd.f32 %v937_v54, %v2737_v37  ;;  %v955_v59 = vadd.f32 %v939_v56, %v2739_v47  ;;  %v957_v55 = vadd.f32 %v941_v18, %v2741_v16  ;;  %v933_v21 = vpop.permute.xlu0 %932 }
 0x1b9   : > { %v959_v33 = vadd.f32 %v943_v20, %v2743_v31  ;;  %v963_v2 = vadd.f32 %v947_v28, %v790_v38  ;;  %v961_v14 = vadd.f32 %v945_v8, %v2745_v52  ;;  %v949_v47 = vmul.f32 %v933_v21, %v901_v45 }
 0x1ba   : > { %v760_v4 = vpop.permute.xlu1 %759  ;;  %v1061_v28 = vadd.f32 %v2769_v19, %v2761_v34 }
 0x1bb   : > { %v776_v51 = vmul.f32 %v760_v4, %v2711_v7  ;;  %v777_v37 = vmul.f32 %v760_v4, %v2670_v46 }
 0x1bd   : > { %v792_v32 = vadd.f32 %v776_v51, %v603_v29  ;;  %v793_v16 = vadd.f32 %v777_v37, %v604_v9  ;;  %v1082_v50 = vpop.permute.xlu0 %1081 }
 0x1bf   : > { %v1078_v31 = vpop.permute.xlu1 %1077  ;;  %v2784_v61 = vadd.f32 %v949_v47, %v792_v32 }
 0x1c1   : > { %v1086_v52 = vpop.permute.xlu0 %1085 }
 0x1c3   : > { %v1090_v15 = vpop.permute.xlu1 %1089 }
 0x1c5   : > { %v1069_v7 = vpop.permute.xlu0 %1068 }
 0x1c7   : > { %v898_v13 = vpop.permute.xlu1 %897 }
 0x1c8   : > { %v902_v22 = vadd.f32 %v898_v13, %v888_v17 }
 0x1c9   : > { %v1102_v45 = vpop.permute.xlu0 %1101 }
 0x1ca   : > { %v936_v49 = vmul.f32 %v905_v10, %v902_v22  ;;  %v938_v12 = vmul.f32 %v909_v53, %v902_v22  ;;  %v940_v42 = vmul.f32 %v2621_v60, %v902_v22  ;;  %v942_v40 = vmul.f32 %v917_v27, %v902_v22 }
 0x1cb   : > { %v944_v46 = vmul.f32 %v921_v39, %v902_v22  ;;  %v946_v62 = vmul.f32 %v925_v58, %v902_v22  ;;  %v948_v26 = vmul.f32 %v929_v57, %v902_v22  ;;  %v1055_v35 = vpop.permute.xlu1 %1054  ;;  %v950_v41 = vmul.f32 %v933_v21, %v902_v22 }
 0x1cc   : > { %v952_v38 = vadd.f32 %v936_v49, %v2697_v24  ;;  %v954_v1 = vadd.f32 %v938_v12, %v2699_v25  ;;  %v956_v43 = vadd.f32 %v940_v42, %v2701_v5  ;;  %v958_v23 = vadd.f32 %v942_v40, %v2703_v63 }
 0x1cd   : > { %v960_v10 = vadd.f32 %v944_v46, %v2707_v3  ;;  %v962_v53 = vadd.f32 %v946_v62, %v2709_v6  ;;  %v964_v60 = vadd.f32 %v948_v26, %v791_v0  ;;  %v1060_v30 = vadd.f32 %v1055_v35, %v2759_v36 }
 0x1ce   : > { %v2795_v27 = vadd.f32 %v950_v41, %v793_v16 }
 0x1cf   : > { %v1074_v58 = vadd.f32 %v1069_v7, %v1060_v30  ;;  %v1094_v57 = vpop.permute.xlu1 %1093 }
 0x1d1   : > { %v1108_v39 = vmul.f32 %v1078_v31, %v1074_v58  ;;  %v1110_v24 = vmul.f32 %v1082_v50, %v1074_v58  ;;  %v1112_v48 = vmul.f32 %v1086_v52, %v1074_v58  ;;  %v1114_v25 = vmul.f32 %v1090_v15, %v1074_v58 }
 0x1d2   : > { %v1116_v5 = vmul.f32 %v1094_v57, %v1074_v58  ;;  %v1120_v54 = vmul.f32 %v1102_v45, %v1074_v58 }
 0x1d3   : > { %v1124_v63 = vadd.f32 %v1108_v39, %v951_v11  ;;  %v1126_v56 = vadd.f32 %v1110_v24, %v953_v44  ;;  %v1128_v3 = vadd.f32 %v1112_v48, %v955_v59  ;;  %v1130_v18 = vadd.f32 %v1114_v25, %v957_v55  ;;  %v1098_v6 = vpop.permute.xlu1 %1097 }
 0x1d4   : > { %v1132_v0 = vadd.f32 %v1116_v5, %v959_v33  ;;  %v1136_v20 = vadd.f32 %v1120_v54, %v963_v2  ;;  %v1118_v36 = vmul.f32 %v1098_v6, %v1074_v58 }
 0x1d5   : > { %1141 = vst.msk [vmem:[#allocation3] sm:$0xff] %vm1140_vm3, %v1124_v63  ;;  %1143 = vst.msk [vmem:[#allocation3 + $0x10] sm:$0xff] %vm1140_vm3, %v1126_v56 }
 0x1d6   : > { %1145 = vst.msk [vmem:[#allocation3 + $0x20] sm:$0xff] %vm1140_vm3, %v1128_v3  ;;  %1147 = vst.msk [vmem:[#allocation3 + $0x30] sm:$0xff] %vm1140_vm3, %v1130_v18  ;;  %v1134_v8 = vadd.f32 %v1118_v36, %v961_v14 }
 0x1d7   : > { %1149 = vst.msk [vmem:[#allocation3 + $0x40] sm:$0xff] %vm1140_vm3, %v1132_v0  ;;  %1153 = vst.msk [vmem:[#allocation3 + $0x60] sm:$0xff] %vm1140_vm3, %v1136_v20  ;;  %v1071_v11 = vpop.permute.xlu1 %1070 }
 0x1d8   : > { %1151 = vst.msk [vmem:[#allocation3 + $0x50] sm:$0xff] %vm1140_vm3, %v1134_v8  ;;  %v1075_v44 = vadd.f32 %v1071_v11, %v1061_v28 }
 0x1da   : > { %v1109_v59 = vmul.f32 %v1078_v31, %v1075_v44  ;;  %v1111_v55 = vmul.f32 %v1082_v50, %v1075_v44  ;;  %v1113_v33 = vmul.f32 %v1086_v52, %v1075_v44  ;;  %v1115_v21 = vmul.f32 %v1090_v15, %v1075_v44 }
 0x1db   : > { %v1117_v2 = vmul.f32 %v1094_v57, %v1075_v44  ;;  %v1119_v4 = vmul.f32 %v1098_v6, %v1075_v44  ;;  %v1121_v29 = vmul.f32 %v1102_v45, %v1075_v44  ;;  %v1106_v34 = vpop.permute.xlu1 %1105 }
 0x1dc   : > { %v1125_v19 = vadd.f32 %v1109_v59, %v952_v38  ;;  %v1127_v9 = vadd.f32 %v1111_v55, %v954_v1  ;;  %v1129_v51 = vadd.f32 %v1113_v33, %v956_v43  ;;  %v1131_v14 = vadd.f32 %v1115_v21, %v958_v23  ;;  %v1200_v37 = vld [vmem:[#allocation3 + $0x11] sm:$0x1]  ;;  %v1199_v31 = vld [vmem:[#allocation3 + $0x1] sm:$0x1]  ;;  %v1235_v40 = vld [vmem:[#allocation3 + $0x12] sm:$0x1] }
 0x1dd   : > { %v1201_v47 = vld [vmem:[#allocation3 + $0x21] sm:$0x1]  ;;  %v1133_v32 = vadd.f32 %v1117_v2, %v960_v10  ;;  %v1135_v16 = vadd.f32 %v1119_v4, %v962_v53  ;;  %v1137_v17 = vadd.f32 %v1121_v29, %v964_v60  ;;  %v1122_v13 = vmul.f32 %v1106_v34, %v1074_v58  ;;  %v1202_v22 = vld [vmem:[#allocation3 + $0x31] sm:$0x1]  ;;  %v1236_v26 = vld [vmem:[#allocation3 + $0x22] sm:$0x1] }
 0x1de   : > { %1142 = vst.msk [vmem:[#allocation3 + $0x8] sm:$0xff] %vm1140_vm3, %v1125_v19  ;;  %1144 = vst.msk [vmem:[#allocation3 + $0x18] sm:$0xff] %vm1140_vm3, %v1127_v9  ;;  %v1123_v50 = vmul.f32 %v1106_v34, %v1075_v44  ;;  %v1215_v15 = vrot.slane %v1200_v37, 7  ;;  %v1217_v52 = vrot.slane %v1201_v47, 6  ;;  %v1203_v12 = vld [vmem:[#allocation3 + $0x41] sm:$0x1] }
 0x1df   : > { %1146 = vst.msk [vmem:[#allocation3 + $0x28] sm:$0xff] %vm1140_vm3, %v1129_v51  ;;  %1148 = vst.msk [vmem:[#allocation3 + $0x38] sm:$0xff] %vm1140_vm3, %v1131_v14  ;;  %v1138_v49 = vadd.f32 %v1122_v13, %v2784_v61  ;;  %v1204_v42 = vld [vmem:[#allocation3 + $0x51] sm:$0x1]  ;;  %v1219_v62 = vrot.slane %v1202_v22, 5  ;;  %v1250_v41 = vrot.slane %v1235_v40, 7 }
 0x1e0   : > { %1150 = vst.msk [vmem:[#allocation3 + $0x48] sm:$0xff] %vm1140_vm3, %v1133_v32  ;;  %1152 = vst.msk [vmem:[#allocation3 + $0x58] sm:$0xff] %vm1140_vm3, %v1135_v16  ;;  %v1139_v7 = vadd.f32 %v1123_v50, %v2795_v27  ;;  %v1216_v46 = vsel %vm1174_vm4, %v1215_v15, %v1199_v31  ;;  %v1237_v35 = vld [vmem:[#allocation3 + $0x32] sm:$0x1]  ;;  %v1234_v1 = vld [vmem:[#allocation3 + $0x2] sm:$0x1] }
 0x1e1   : > { %1154 = vst.msk [vmem:[#allocation3 + $0x68] sm:$0xff] %vm1140_vm3, %v1137_v17  ;;  %1155 = vst.msk [vmem:[#allocation3 + $0x70] sm:$0xff] %vm1140_vm3, %v1138_v49  ;;  %v1218_v38 = vsel %vm1177_vm5, %v1217_v52, %v1216_v46  ;;  %v1238_v43 = vld [vmem:[#allocation3 + $0x42] sm:$0x1]  ;;  %v1239_v23 = vld [vmem:[#allocation3 + $0x52] sm:$0x1]  ;;  %v1251_v30 = vsel %vm1174_vm4, %v1250_v41, %v1234_v1 }
 0x1e2   : > { %1156 = vst.msk [vmem:[#allocation3 + $0x78] sm:$0xff] %vm1140_vm3, %v1139_v7  ;;  %v1205_v61 = vld [vmem:[#allocation3 + $0x61] sm:$0x1]  ;;  %v1220_v10 = vsel %vm1180_vm6, %v1219_v62, %v1218_v38  ;;  %v1221_v53 = vrot.slane %v1203_v12, 4  ;;  %v1240_v60 = vld [vmem:[#allocation3 + $0x62] sm:$0x1] }
 0x1e3   : > { %v1252_v27 = vrot.slane %v1236_v26, 6  ;;  %v1223_v58 = vrot.slane %v1204_v42, 3  ;;  %v1254_v57 = vrot.slane %v1237_v35, 5  ;;  %v1256_v24 = vrot.slane %v1238_v43, 4  ;;  %v1270_v3 = vld [vmem:[#allocation3 + $0x13] sm:$0x1] }
 0x1e4   : > { %v1222_v45 = vsel %vm1183_vm7, %v1221_v53, %v1220_v10  ;;  %v1258_v48 = vrot.slane %v1239_v23, 3  ;;  %v1225_v25 = vrot.slane %v1205_v61, 2  ;;  %v1260_v56 = vrot.slane %v1240_v60, 2  ;;  %v1269_v17 = vld [vmem:[#allocation3 + $0x3] sm:$0x1] }
 0x1e5   : > { %v1253_v39 = vsel %vm1177_vm5, %v1252_v27, %v1251_v30  ;;  %v1477_v5 = vld [vmem:[#allocation3 + $0x19] sm:$0x1]  ;;  %v1476_v18 = vld [vmem:[#allocation3 + $0x9] sm:$0x1]  ;;  %v1224_v28 = vsel %vm1186_vm8, %v1223_v58, %v1222_v45  ;;  %v1511_v32 = vld [vmem:[#allocation3 + $0x1a] sm:$0x1] }
 0x1e6   : > { %v1478_v54 = vld [vmem:[#allocation3 + $0x29] sm:$0x1]  ;;  %v1255_v63 = vsel %vm1180_vm6, %v1254_v57, %v1253_v39  ;;  %v1479_v6 = vld [vmem:[#allocation3 + $0x39] sm:$0x1]  ;;  %v1492_v11 = vrot.slane %v1477_v5, 7  ;;  %v1226_v14 = vsel %vm1189_vm9, %v1225_v25, %v1224_v28  ;;  %v1285_v22 = vrot.slane %v1270_v3, 7 }
 0x1e7   : > { %v1480_v0 = vld [vmem:[#allocation3 + $0x49] sm:$0x1]  ;;  %v1481_v20 = vld [vmem:[#allocation3 + $0x59] sm:$0x1]  ;;  %v1257_v36 = vsel %vm1183_vm7, %v1256_v24, %v1255_v63  ;;  %v1494_v44 = vrot.slane %v1478_v54, 6  ;;  %v1496_v59 = vrot.slane %v1479_v6, 5 }
 0x1e8   : > { %v1482_v8 = vld [vmem:[#allocation3 + $0x69] sm:$0x1]  ;;  %v1206_v55 = vld [vmem:[#allocation3 + $0x71] sm:$0x1]  ;;  %v1498_v33 = vrot.slane %v1480_v0, 4  ;;  %v1500_v21 = vrot.slane %v1481_v20, 3  ;;  %v1259_v4 = vsel %vm1186_vm8, %v1258_v48, %v1257_v36  ;;  %v1493_v19 = vsel %vm1174_vm4, %v1492_v11, %v1476_v18 }
 0x1e9   : > { %v1241_v2 = vld [vmem:[#allocation3 + $0x72] sm:$0x1]  ;;  %v1227_v29 = vrot.slane %v1206_v55, 1  ;;  %v1483_v34 = vld [vmem:[#allocation3 + $0x79] sm:$0x1]  ;;  %v1502_v9 = vrot.slane %v1482_v8, 2  ;;  %v1495_v37 = vsel %vm1177_vm5, %v1494_v44, %v1493_v19  ;;  %v1261_v15 = vsel %vm1189_vm9, %v1260_v56, %v1259_v4 }
 0x1ea   : > { %v1262_v51 = vrot.slane %v1241_v2, 1  ;;  %v1504_v47 = vrot.slane %v1483_v34, 1  ;;  %v1512_v16 = vld [vmem:[#allocation3 + $0x2a] sm:$0x1]  ;;  %v1271_v13 = vld [vmem:[#allocation3 + $0x23] sm:$0x1]  ;;  %v1497_v31 = vsel %vm1180_vm6, %v1496_v59, %v1495_v37  ;;  %v1286_v10 = vsel %vm1174_vm4, %v1285_v22, %v1269_v17 }
 0x1eb   : > { %v1228_v50 = vsel %vm1192_vm10, %v1227_v29, %v1226_v14  ;;  %v1513_v52 = vld [vmem:[#allocation3 + $0x3a] sm:$0x1]  ;;  %v1514_v49 = vld [vmem:[#allocation3 + $0x4a] sm:$0x1]  ;;  %v1272_v42 = vld [vmem:[#allocation3 + $0x33] sm:$0x1]  ;;  %v1499_v7 = vsel %vm1183_vm7, %v1498_v33, %v1497_v31 }
 0x1ec   : > { %v1515_v12 = vld [vmem:[#allocation3 + $0x5a] sm:$0x1]  ;;  %v1273_v40 = vld [vmem:[#allocation3 + $0x43] sm:$0x1]  ;;  %1229 = vrot.lane.b32.xlu1 %v1228_v50, %s2178_s26  ;;  %v1263_v46 = vsel %vm1192_vm10, %v1262_v51, %v1261_v15  ;;  %v1516_v62 = vld [vmem:[#allocation3 + $0x6a] sm:$0x1]  ;;  %v1501_v38 = vsel %vm1186_vm8, %v1500_v21, %v1499_v7 }
 0x1ed   : > { %v1517_v26 = vld [vmem:[#allocation3 + $0x7a] sm:$0x1]  ;;  %v1526_v35 = vrot.slane %v1511_v32, 7  ;;  %v1528_v41 = vrot.slane %v1512_v16, 6  ;;  %v1510_v1 = vld [vmem:[#allocation3 + $0xa] sm:$0x1]  ;;  %v1503_v53 = vsel %vm1189_vm9, %v1502_v9, %v1501_v38 }
 0x1ee   : > { %v1530_v43 = vrot.slane %v1513_v52, 5  ;;  %v1532_v23 = vrot.slane %v1514_v49, 4  ;;  %v1274_v61 = vld [vmem:[#allocation3 + $0x53] sm:$0x1]  ;;  %v1534_v30 = vrot.slane %v1515_v12, 3  ;;  %v1536_v27 = vrot.slane %v1516_v62, 2 }
 0x1ef   : > { %v1527_v60 = vsel %vm1174_vm4, %v1526_v35, %v1510_v1  ;;  %v1275_v58 = vld [vmem:[#allocation3 + $0x63] sm:$0x1]  ;;  %v1276_v57 = vld [vmem:[#allocation3 + $0x73] sm:$0x1]  ;;  %v1505_v45 = vsel %vm1192_vm10, %v1504_v47, %v1503_v53  ;;  %v1538_v24 = vrot.slane %v1517_v26, 1  ;;  %v1287_v48 = vrot.slane %v1271_v13, 6 }
 0x1f0   : > { %v1529_v39 = vsel %vm1177_vm5, %v1528_v41, %v1527_v60  ;;  %v1545_v25 = vld [vmem:[#allocation3 + $0x1b] sm:$0x1]  ;;  %v1546_v5 = vld [vmem:[#allocation3 + $0x2b] sm:$0x1]  ;;  %1506 = vrot.lane.b32.xlu0 %v1505_v45, %s2178_s26  ;;  %1264 = vrot.lane.b32.xlu1 %v1263_v46, %s2179_s30  ;;  %v1289_v63 = vrot.slane %v1272_v42, 5  ;;  %v1291_v56 = vrot.slane %v1273_v40, 4 }
 0x1f1   : > { %v1531_v54 = vsel %vm1180_vm6, %v1530_v43, %v1529_v39  ;;  %v1293_v3 = vrot.slane %v1274_v61, 3  ;;  %v1547_v18 = vld [vmem:[#allocation3 + $0x3b] sm:$0x1]  ;;  %v1288_v0 = vsel %vm1177_vm5, %v1287_v48, %v1286_v10  ;;  %v1295_v20 = vrot.slane %v1275_v58, 2  ;;  %v1544_v36 = vld [vmem:[#allocation3 + $0xb] sm:$0x1] }
 0x1f2   : > { %v1533_v6 = vsel %vm1183_vm7, %v1532_v23, %v1531_v54  ;;  %v1548_v28 = vld [vmem:[#allocation3 + $0x4b] sm:$0x1]  ;;  %v1560_v8 = vrot.slane %v1545_v25, 7  ;;  %v1290_v44 = vsel %vm1180_vm6, %v1289_v63, %v1288_v0  ;;  %v1297_v59 = vrot.slane %v1276_v57, 1  ;;  %v1549_v55 = vld [vmem:[#allocation3 + $0x5b] sm:$0x1] }
 0x1f3   : > { %v1535_v11 = vsel %vm1186_vm8, %v1534_v30, %v1533_v6  ;;  %v1550_v33 = vld [vmem:[#allocation3 + $0x6b] sm:$0x1]  ;;  %v1562_v21 = vrot.slane %v1546_v5, 6  ;;  %v1292_v4 = vsel %vm1183_vm7, %v1291_v56, %v1290_v44  ;;  %v1564_v34 = vrot.slane %v1547_v18, 5  ;;  %v1305_v19 = vld [vmem:[#allocation3 + $0x14] sm:$0x1] }
 0x1f4   : > { %v1537_v2 = vsel %vm1189_vm9, %v1536_v27, %v1535_v11  ;;  %v1561_v29 = vsel %vm1174_vm4, %v1560_v8, %v1544_v36  ;;  %v1294_v51 = vsel %vm1186_vm8, %v1293_v3, %v1292_v4  ;;  %v1551_v14 = vld [vmem:[#allocation3 + $0x7b] sm:$0x1]  ;;  %v1566_v47 = vrot.slane %v1548_v28, 4  ;;  %v1306_v32 = vld [vmem:[#allocation3 + $0x24] sm:$0x1] }
 0x1f5   : > { %v1539_v9 = vsel %vm1192_vm10, %v1538_v24, %v1537_v2  ;;  %v1563_v37 = vsel %vm1177_vm5, %v1562_v21, %v1561_v29  ;;  %v1296_v16 = vsel %vm1189_vm9, %v1295_v20, %v1294_v51  ;;  %v1568_v13 = vrot.slane %v1549_v55, 3  ;;  %v1307_v50 = vld [vmem:[#allocation3 + $0x34] sm:$0x1]  ;;  %v1308_v49 = vld [vmem:[#allocation3 + $0x44] sm:$0x1] }
 0x1f6   : > { %1540 = vrot.lane.b32.xlu0 %v1539_v9, %s2179_s30  ;;  %v1565_v17 = vsel %vm1180_vm6, %v1564_v34, %v1563_v37  ;;  %v1570_v22 = vrot.slane %v1550_v33, 2  ;;  %v1309_v31 = vld [vmem:[#allocation3 + $0x54] sm:$0x1]  ;;  %v1298_v15 = vsel %vm1192_vm10, %v1297_v59, %v1296_v16  ;;  %v1320_v42 = vrot.slane %v1305_v19, 7  ;;  %v1304_v62 = vld [vmem:[#allocation3 + $0x4] sm:$0x1] }
 0x1f7   : > { %v1567_v52 = vsel %vm1183_vm7, %v1566_v47, %v1565_v17  ;;  %v1311_v12 = vld [vmem:[#allocation3 + $0x74] sm:$0x1]  ;;  %v1322_v40 = vrot.slane %v1306_v32, 6  ;;  %1299 = vrot.lane.b32.xlu1 %v1298_v15, %s2180_s11  ;;  %v1572_v46 = vrot.slane %v1551_v14, 1  ;;  %v1310_v26 = vld [vmem:[#allocation3 + $0x64] sm:$0x1] }
 0x1f8   : > { %v1569_v7 = vsel %vm1186_vm8, %v1568_v13, %v1567_v52  ;;  %v1321_v41 = vsel %vm1174_vm4, %v1320_v42, %v1304_v62  ;;  %v1324_v38 = vrot.slane %v1307_v50, 5  ;;  %v1328_v1 = vrot.slane %v1309_v31, 3  ;;  %v1579_v43 = vld [vmem:[#allocation3 + $0x1c] sm:$0x1]  ;;  %v1580_v23 = vld [vmem:[#allocation3 + $0x2c] sm:$0x1] }
 0x1f9   : > { %v1571_v35 = vsel %vm1189_vm9, %v1570_v22, %v1569_v7  ;;  %v1323_v10 = vsel %vm1177_vm5, %v1322_v40, %v1321_v41  ;;  %v1326_v53 = vrot.slane %v1308_v49, 4  ;;  %v1332_v60 = vrot.slane %v1311_v12, 1  ;;  %v1578_v30 = vld [vmem:[#allocation3 + $0xc] sm:$0x1]  ;;  %v1581_v27 = vld [vmem:[#allocation3 + $0x3c] sm:$0x1] }
 0x1fa   : > { %v1573_v61 = vsel %vm1192_vm10, %v1572_v46, %v1571_v35  ;;  %v1325_v58 = vsel %vm1180_vm6, %v1324_v38, %v1323_v10  ;;  %v1582_v57 = vld [vmem:[#allocation3 + $0x4c] sm:$0x1]  ;;  %v1583_v45 = vld [vmem:[#allocation3 + $0x5c] sm:$0x1]  ;;  %v1594_v39 = vrot.slane %v1579_v43, 7  ;;  %v1596_v24 = vrot.slane %v1580_v23, 6 }
 0x1fb   : > { %1574 = vrot.lane.b32.xlu0 %v1573_v61, %s2180_s11  ;;  %v1327_v48 = vsel %vm1183_vm7, %v1326_v53, %v1325_v58  ;;  %v1330_v25 = vrot.slane %v1310_v26, 2  ;;  %v1584_v5 = vld [vmem:[#allocation3 + $0x6c] sm:$0x1]  ;;  %v1585_v54 = vld [vmem:[#allocation3 + $0x7c] sm:$0x1]  ;;  %v1598_v3 = vrot.slane %v1581_v27, 5 }
 0x1fc   : > { %v1329_v63 = vsel %vm1186_vm8, %v1328_v1, %v1327_v48  ;;  %v1595_v56 = vsel %vm1174_vm4, %v1594_v39, %v1578_v30  ;;  %v1340_v18 = vld [vmem:[#allocation3 + $0x15] sm:$0x1]  ;;  %v1341_v6 = vld [vmem:[#allocation3 + $0x25] sm:$0x1]  ;;  %v1600_v36 = vrot.slane %v1582_v57, 4  ;;  %v1602_v28 = vrot.slane %v1583_v45, 3 }
 0x1fd   : > { %v1331_v0 = vsel %vm1189_vm9, %v1330_v25, %v1329_v63  ;;  %v1597_v20 = vsel %vm1177_vm5, %v1596_v24, %v1595_v56  ;;  %v1342_v8 = vld [vmem:[#allocation3 + $0x35] sm:$0x1]  ;;  %v1343_v55 = vld [vmem:[#allocation3 + $0x45] sm:$0x1]  ;;  %v1355_v21 = vrot.slane %v1340_v18, 7  ;;  %v1357_v2 = vrot.slane %v1341_v6, 6 }
 0x1fe   : > { %v1344_v11 = vld [vmem:[#allocation3 + $0x55] sm:$0x1]  ;;  %v1333_v44 = vsel %vm1192_vm10, %v1332_v60, %v1331_v0  ;;  %v1599_v59 = vsel %vm1180_vm6, %v1598_v3, %v1597_v20  ;;  %v1604_v29 = vrot.slane %v1584_v5, 2  ;;  %v1606_v34 = vrot.slane %v1585_v54, 1  ;;  %v1339_v19 = vld [vmem:[#allocation3 + $0x5] sm:$0x1] }
 0x1ff   : > { %v1346_v33 = vld [vmem:[#allocation3 + $0x75] sm:$0x1]  ;;  %1334 = vrot.lane.b32.xlu1 %v1333_v44, %s2181_s29  ;;  %v1601_v4 = vsel %vm1183_vm7, %v1600_v36, %v1599_v59  ;;  %v1345_v9 = vld [vmem:[#allocation3 + $0x65] sm:$0x1]  ;;  %v1356_v14 = vsel %vm1174_vm4, %v1355_v21, %v1339_v19  ;;  %v1359_v37 = vrot.slane %v1342_v8, 5  ;;  %v1363_v47 = vrot.slane %v1344_v11, 3 }
 0x200   : > { %v1603_v51 = vsel %vm1186_vm8, %v1602_v28, %v1601_v4  ;;  %v1613_v32 = vld [vmem:[#allocation3 + $0x1d] sm:$0x1]  ;;  %v1614_v16 = vld [vmem:[#allocation3 + $0x2d] sm:$0x1]  ;;  %v1358_v13 = vsel %vm1177_vm5, %v1357_v2, %v1356_v14  ;;  %v1361_v22 = vrot.slane %v1343_v55, 4  ;;  %v1367_v50 = vrot.slane %v1346_v33, 1 }
 0x201   : > { %v1605_v17 = vsel %vm1189_vm9, %v1604_v29, %v1603_v51  ;;  %v1612_v31 = vld [vmem:[#allocation3 + $0xd] sm:$0x1]  ;;  %v1615_v15 = vld [vmem:[#allocation3 + $0x3d] sm:$0x1]  ;;  %v1360_v49 = vsel %vm1180_vm6, %v1359_v37, %v1358_v13  ;;  %v1628_v40 = vrot.slane %v1613_v32, 7  ;;  %v1630_v7 = vrot.slane %v1614_v16, 6 }
 0x202   : > { %v1607_v52 = vsel %vm1192_vm10, %v1606_v34, %v1605_v17  ;;  %v1616_v12 = vld [vmem:[#allocation3 + $0x4d] sm:$0x1]  ;;  %v1617_v42 = vld [vmem:[#allocation3 + $0x5d] sm:$0x1]  ;;  %v1362_v46 = vsel %vm1183_vm7, %v1361_v22, %v1360_v49  ;;  %v1365_v62 = vrot.slane %v1345_v9, 2  ;;  %v1632_v1 = vrot.slane %v1615_v15, 5 }
 0x203   : > { %1608 = vrot.lane.b32.xlu0 %v1607_v52, %s2181_s29  ;;  %v1618_v26 = vld [vmem:[#allocation3 + $0x6d] sm:$0x1]  ;;  %v1619_v35 = vld [vmem:[#allocation3 + $0x7d] sm:$0x1]  ;;  %v1364_v41 = vsel %vm1186_vm8, %v1363_v47, %v1362_v46  ;;  %v1629_v38 = vsel %vm1174_vm4, %v1628_v40, %v1612_v31  ;;  %v1375_v43 = vld [vmem:[#allocation3 + $0x16] sm:$0x1] }
 0x204   : > { %v1376_v23 = vld [vmem:[#allocation3 + $0x26] sm:$0x1]  ;;  %v1366_v61 = vsel %vm1189_vm9, %v1365_v62, %v1364_v41  ;;  %v1631_v10 = vsel %vm1177_vm5, %v1630_v7, %v1629_v38  ;;  %v1634_v53 = vrot.slane %v1616_v12, 4  ;;  %v1636_v60 = vrot.slane %v1617_v42, 3  ;;  %v1377_v30 = vld [vmem:[#allocation3 + $0x36] sm:$0x1] }
 0x205   : > { %v1379_v27 = vld [vmem:[#allocation3 + $0x56] sm:$0x1]  ;;  %v1368_v58 = vsel %vm1192_vm10, %v1367_v50, %v1366_v61  ;;  %v1633_v57 = vsel %vm1180_vm6, %v1632_v1, %v1631_v10  ;;  %v1378_v45 = vld [vmem:[#allocation3 + $0x46] sm:$0x1]  ;;  %v1390_v24 = vrot.slane %v1375_v43, 7  ;;  %v1392_v48 = vrot.slane %v1376_v23, 6 }
 0x206   : > { %v1381_v39 = vld [vmem:[#allocation3 + $0x76] sm:$0x1]  ;;  %1369 = vrot.lane.b32.xlu1 %v1368_v58, %s2182_s6  ;;  %v1635_v25 = vsel %vm1183_vm7, %v1634_v53, %v1633_v57  ;;  %v1638_v5 = vrot.slane %v1618_v26, 2  ;;  %v1640_v54 = vrot.slane %v1619_v35, 1  ;;  %v1374_v63 = vld [vmem:[#allocation3 + $0x6] sm:$0x1] }
 0x207   : > { %v1380_v56 = vld [vmem:[#allocation3 + $0x66] sm:$0x1]  ;;  %v1637_v3 = vsel %vm1186_vm8, %v1636_v60, %v1635_v25  ;;  %v1391_v18 = vsel %vm1174_vm4, %v1390_v24, %v1374_v63  ;;  %v1394_v6 = vrot.slane %v1377_v30, 5  ;;  %v1398_v0 = vrot.slane %v1379_v27, 3  ;;  %v1647_v20 = vld [vmem:[#allocation3 + $0x1e] sm:$0x1] }
 0x208   : > { %v1648_v36 = vld [vmem:[#allocation3 + $0x2e] sm:$0x1]  ;;  %v1639_v28 = vsel %vm1189_vm9, %v1638_v5, %v1637_v3  ;;  %v1393_v8 = vsel %vm1177_vm5, %v1392_v48, %v1391_v18  ;;  %v1396_v11 = vrot.slane %v1378_v45, 4  ;;  %v1402_v44 = vrot.slane %v1381_v39, 1  ;;  %v1649_v55 = vld [vmem:[#allocation3 + $0x3e] sm:$0x1] }
 0x209   : > { %v1646_v59 = vld [vmem:[#allocation3 + $0xe] sm:$0x1]  ;;  %v1641_v33 = vsel %vm1192_vm10, %v1640_v54, %v1639_v28  ;;  %v1395_v21 = vsel %vm1180_vm6, %v1394_v6, %v1393_v8  ;;  %v1651_v4 = vld [vmem:[#allocation3 + $0x5e] sm:$0x1]  ;;  %v1662_v29 = vrot.slane %v1647_v20, 7  ;;  %v1664_v34 = vrot.slane %v1648_v36, 6 }
 0x20a   : > { %v1650_v2 = vld [vmem:[#allocation3 + $0x4e] sm:$0x1]  ;;  %1642 = vrot.lane.b32.xlu0 %v1641_v33, %s2182_s6  ;;  %v1397_v19 = vsel %vm1183_vm7, %v1396_v11, %v1395_v21  ;;  %v1400_v9 = vrot.slane %v1380_v56, 2  ;;  %v1653_v14 = vld [vmem:[#allocation3 + $0x7e] sm:$0x1]  ;;  %v1666_v32 = vrot.slane %v1649_v55, 5 }
 0x20b   : > { %v1652_v51 = vld [vmem:[#allocation3 + $0x6e] sm:$0x1]  ;;  %v1399_v37 = vsel %vm1186_vm8, %v1398_v0, %v1397_v19  ;;  %v1663_v47 = vsel %vm1174_vm4, %v1662_v29, %v1646_v59  ;;  %v1410_v16 = vld [vmem:[#allocation3 + $0x17] sm:$0x1]  ;;  %v1411_v17 = vld [vmem:[#allocation3 + $0x27] sm:$0x1] }
 0x20c   : > { %v1401_v13 = vsel %vm1189_vm9, %v1400_v9, %v1399_v37  ;;  %v1665_v22 = vsel %vm1177_vm5, %v1664_v34, %v1663_v47  ;;  %v1668_v50 = vrot.slane %v1650_v2, 4  ;;  %v1670_v31 = vrot.slane %v1651_v4, 3  ;;  %v1412_v15 = vld [vmem:[#allocation3 + $0x37] sm:$0x1]  ;;  %v1413_v42 = vld [vmem:[#allocation3 + $0x47] sm:$0x1] }
 0x20d   : > { %v1414_v52 = vld [vmem:[#allocation3 + $0x57] sm:$0x1]  ;;  %v1403_v49 = vsel %vm1192_vm10, %v1402_v44, %v1401_v13  ;;  %v1667_v12 = vsel %vm1180_vm6, %v1666_v32, %v1665_v22  ;;  %v1425_v7 = vrot.slane %v1410_v16, 7  ;;  %v1427_v46 = vrot.slane %v1411_v17, 6  ;;  %v1409_v41 = vld [vmem:[#allocation3 + $0x7] sm:$0x1] }
 0x20e   : > { %v1416_v40 = vld [vmem:[#allocation3 + $0x77] sm:$0x1]  ;;  %1404 = vrot.lane.b32.xlu1 %v1403_v49, %s2183_s8  ;;  %v1669_v62 = vsel %vm1183_vm7, %v1668_v50, %v1667_v12  ;;  %v1672_v26 = vrot.slane %v1652_v51, 2  ;;  %v1674_v35 = vrot.slane %v1653_v14, 1  ;;  %v1415_v38 = vld [vmem:[#allocation3 + $0x67] sm:$0x1] }
 0x20f   : > { %v1671_v1 = vsel %vm1186_vm8, %v1670_v31, %v1669_v62  ;;  %v1426_v43 = vsel %vm1174_vm4, %v1425_v7, %v1409_v41  ;;  %v1429_v23 = vrot.slane %v1412_v15, 5  ;;  %v1433_v61 = vrot.slane %v1414_v52, 3  ;;  %v1681_v10 = vld [vmem:[#allocation3 + $0x1f] sm:$0x1]  ;;  %v1682_v53 = vld [vmem:[#allocation3 + $0x2f] sm:$0x1] }
 0x210   : > { %v1673_v60 = vsel %vm1189_vm9, %v1672_v26, %v1671_v1  ;;  %v1428_v30 = vsel %vm1177_vm5, %v1427_v46, %v1426_v43  ;;  %v1431_v27 = vrot.slane %v1413_v42, 4  ;;  %v1437_v58 = vrot.slane %v1416_v40, 1  ;;  %v1680_v57 = vld [vmem:[#allocation3 + $0xf] sm:$0x1]  ;;  %v1683_v45 = vld [vmem:[#allocation3 + $0x3f] sm:$0x1] }
 0x211   : > { %v1675_v39 = vsel %vm1192_vm10, %v1674_v35, %v1673_v60  ;;  %v1430_v24 = vsel %vm1180_vm6, %v1429_v23, %v1428_v30  ;;  %v1684_v48 = vld [vmem:[#allocation3 + $0x4f] sm:$0x1]  ;;  %v1685_v25 = vld [vmem:[#allocation3 + $0x5f] sm:$0x1]  ;;  %v1696_v5 = vrot.slane %v1681_v10, 7  ;;  %v1698_v54 = vrot.slane %v1682_v53, 6 }
 0x212   : > { %1676 = vrot.lane.b32.xlu0 %v1675_v39, %s2183_s8  ;;  %v1432_v63 = vsel %vm1183_vm7, %v1431_v27, %v1430_v24  ;;  %v1435_v56 = vrot.slane %v1415_v38, 2  ;;  %v1686_v3 = vld [vmem:[#allocation3 + $0x6f] sm:$0x1]  ;;  %v1687_v18 = vld [vmem:[#allocation3 + $0x7f] sm:$0x1]  ;;  %v1700_v20 = vrot.slane %v1683_v45, 5 }
 0x213   : > { %v1434_v6 = vsel %vm1186_vm8, %v1433_v61, %v1432_v63  ;;  %v1697_v0 = vsel %vm1174_vm4, %v1696_v5, %v1680_v57  ;;  %v1158_v36 = vld [vmem:[#allocation3 + $0x10] sm:$0x1]  ;;  %v1159_v28 = vld [vmem:[#allocation3 + $0x20] sm:$0x1]  ;;  %v1702_v44 = vrot.slane %v1684_v48, 4  ;;  %v1704_v59 = vrot.slane %v1685_v25, 3 }
 0x214   : > { %v1436_v8 = vsel %vm1189_vm9, %v1435_v56, %v1434_v6  ;;  %v1699_v11 = vsel %vm1177_vm5, %v1698_v54, %v1697_v0  ;;  %v1160_v55 = vld [vmem:[#allocation3 + $0x30] sm:$0x1]  ;;  %v1161_v4 = vld [vmem:[#allocation3 + $0x40] sm:$0x1]  ;;  %v1173_v34 = vrot.slane %v1158_v36, 7  ;;  %v1176_v19 = vrot.slane %v1159_v28, 6 }
 0x215   : > { %v1162_v33 = vld [vmem:[#allocation3 + $0x50] sm:$0x1]  ;;  %v1438_v21 = vsel %vm1192_vm10, %v1437_v58, %v1436_v8  ;;  %v1701_v2 = vsel %vm1180_vm6, %v1700_v20, %v1699_v11  ;;  %v1706_v51 = vrot.slane %v1686_v3, 2  ;;  %v1708_v14 = vrot.slane %v1687_v18, 1  ;;  %v1157_v37 = vld [vmem:[#allocation3] sm:$0x1] }
 0x216   : > { %v1164_v29 = vld [vmem:[#allocation3 + $0x70] sm:$0x1]  ;;  %1439 = vrot.lane.b32.xlu1 %v1438_v21, %s2184_s18  ;;  %v1703_v9 = vsel %vm1183_vm7, %v1702_v44, %v1701_v2  ;;  %v1163_v47 = vld [vmem:[#allocation3 + $0x60] sm:$0x1]  ;;  %v1175_v16 = vsel %vm1174_vm4, %v1173_v34, %v1157_v37  ;;  %v1179_v17 = vrot.slane %v1160_v55, 5  ;;  %v1185_v13 = vrot.slane %v1162_v33, 3 }
 0x217   : > { %v1705_v32 = vsel %vm1186_vm8, %v1704_v59, %v1703_v9  ;;  %v1445_v22 = vld [vmem:[#allocation3 + $0x18] sm:$0x1]  ;;  %v1446_v50 = vld [vmem:[#allocation3 + $0x28] sm:$0x1]  ;;  %v1178_v15 = vsel %vm1177_vm5, %v1176_v19, %v1175_v16  ;;  %v1182_v52 = vrot.slane %v1161_v4, 4  ;;  %v1191_v49 = vrot.slane %v1164_v29, 1 }
 0x218   : > { %v1707_v31 = vsel %vm1189_vm9, %v1706_v51, %v1705_v32  ;;  %v1447_v12 = vld [vmem:[#allocation3 + $0x38] sm:$0x1]  ;;  %v1181_v40 = vsel %vm1180_vm6, %v1179_v17, %v1178_v15  ;;  %v1448_v7 = vld [vmem:[#allocation3 + $0x48] sm:$0x1]  ;;  %v1460_v46 = vrot.slane %v1445_v22, 7  ;;  %v1462_v62 = vrot.slane %v1446_v50, 6 }
 0x219   : > { %v1709_v42 = vsel %vm1192_vm10, %v1708_v14, %v1707_v31  ;;  %v1184_v26 = vsel %vm1183_vm7, %v1182_v52, %v1181_v40  ;;  %v1188_v35 = vrot.slane %v1163_v47, 2  ;;  %v1444_v41 = vld [vmem:[#allocation3 + $0x8] sm:$0x1]  ;;  %v1449_v38 = vld [vmem:[#allocation3 + $0x58] sm:$0x1]  ;;  %v1464_v23 = vrot.slane %v1447_v12, 5 }
 0x21a   : > { %1710 = vrot.lane.b32.xlu0 %v1709_v42, %s2184_s18  ;;  %v1187_v1 = vsel %vm1186_vm8, %v1185_v13, %v1184_v26  ;;  %v1461_v43 = vsel %vm1174_vm4, %v1460_v46, %v1444_v41  ;;  %v1450_v61 = vld [vmem:[#allocation3 + $0x68] sm:$0x1]  ;;  %v1451_v53 = vld [vmem:[#allocation3 + $0x78] sm:$0x1]  ;;  %v1466_v30 = vrot.slane %v1448_v7, 4  ;;  %v1468_v57 = vrot.slane %v1449_v38, 3 }
 0x21b   : > { %v1190_v10 = vsel %vm1189_vm9, %v1188_v35, %v1187_v1  ;;  %v1463_v60 = vsel %vm1177_vm5, %v1462_v62, %v1461_v43  ;;  %v1470_v39 = vrot.slane %v1450_v61, 2  ;;  %v1472_v48 = vrot.slane %v1451_v53, 1  ;;  %v1744_v42 = vld [vmem:[%s3005_s3] sm:$0xff] (!%p1960_p7) }
 0x21c   : > { %v1193_v27 = vsel %vm1192_vm10, %v1191_v49, %v1190_v10  ;;  %v1465_v58 = vsel %vm1180_vm6, %v1464_v23, %v1463_v60  ;;  %v2185_v47 = vmov (!%p1960_p7), 0   ;;  %v1748_v46 = vld [vmem:[%s3006_s4] sm:$0xff] (!%p1960_p7) }
 0x21d   : > { %1198 = vst.msk [vmem:[%s2924_s10] sm:$0xff] %vm1140_vm3, %v1193_v27  ;;  %v1467_v45 = vsel %vm1183_vm7, %v1466_v30, %v1465_v58  ;;  %2061 = vset.pattern.permute.xlu0 (!%p1960_p7), %v2185_v47  ;;  %2062 = vset.pattern.permute.xlu1 (!%p1960_p7), %v2185_v47 }
 0x21e   : > { %v1469_v24 = vsel %vm1186_vm8, %v1468_v57, %v1467_v45 }
 0x21f   : > { %v1471_v25 = vsel %vm1189_vm9, %v1470_v39, %v1469_v24 }
 0x220   : > { %v1473_v5 = vsel %vm1192_vm10, %v1472_v48, %v1471_v25 }
 0x221   : > { %1475 = vst.msk [vmem:[%s2924_s10 + $0x8] sm:$0xff] %vm1140_vm3, %v1473_v5 }
 0x25e   : > { %v1230_v54 = vpop.permute.xlu1 %1229 }
 0x25f   : > { %1233 = vst.msk [vmem:[%s2924_s10] sm:$0xff] %vm1232_vm11, %v1230_v54 }
 0x262   : > { %v1507_v63 = vpop.permute.xlu0 %1506  ;;  %v1265_v56 = vpop.permute.xlu1 %1264 }
 0x263   : > { %1509 = vst.msk [vmem:[%s2924_s10 + $0x8] sm:$0xff] %vm1232_vm11, %v1507_v63 }
 0x264   : > { %1268 = vst.msk [vmem:[%s2924_s10] sm:$0xff] %vm1267_vm12, %v1265_v56 }
 0x268   : > { %v1541_v3 = vpop.permute.xlu0 %1540 }
 0x269   : > { %1543 = vst.msk [vmem:[%s2924_s10 + $0x8] sm:$0xff] %vm1267_vm12, %v1541_v3  ;;  %v1300_v18 = vpop.permute.xlu1 %1299 }
 0x26a   : > { %1303 = vst.msk [vmem:[%s2924_s10] sm:$0xff] %vm1302_vm13, %v1300_v18 }
 0x26d   : > { %v1575_v6 = vpop.permute.xlu0 %1574 }
 0x26e   : > { %1577 = vst.msk [vmem:[%s2924_s10 + $0x8] sm:$0xff] %vm1302_vm13, %v1575_v6 }
 0x271   : > { %v1335_v0 = vpop.permute.xlu1 %1334 }
 0x272   : > { %1338 = vst.msk [vmem:[%s2924_s10] sm:$0xff] %vm1337_vm14, %v1335_v0 }
 0x275   : > { %v1609_v20 = vpop.permute.xlu0 %1608 }
 0x276   : > { %1611 = vst.msk [vmem:[%s2924_s10 + $0x8] sm:$0xff] %vm1337_vm14, %v1609_v20 }
 0x278   : > { %v1370_v36 = vpop.permute.xlu1 %1369 }
 0x279   : > { %1373 = vst.msk [vmem:[%s2924_s10] sm:$0xff] %vm1372_vm15, %v1370_v36 }
 0x27c   : > { %v1643_v28 = vpop.permute.xlu0 %1642 }
 0x27d   : > { %1645 = vst.msk [vmem:[%s2924_s10 + $0x8] sm:$0xff] %vm1372_vm15, %v1643_v28 }
 0x280   : > { %v1405_v8 = vpop.permute.xlu1 %1404 }
 0x281   : > { %1408 = vst.msk [vmem:[%s2924_s10] sm:$0xff] %vm1407_vm0, %v1405_v8 }
 0x284   : > { %v1677_v11 = vpop.permute.xlu0 %1676 }
 0x285   : > { %1679 = vst.msk [vmem:[%s2924_s10 + $0x8] sm:$0xff] %vm1407_vm0, %v1677_v11 }
 0x287   : > { %1717 = sbr.rel (%p1960_p7) target bundleno = 968 (0x3c8), region = 56 }
 0x288   : > { %v1440_v44 = vpop.permute.xlu1 %1439 }
 0x289   : > { %1443 = vst.msk [vmem:[%s2924_s10] sm:$0xff] %vm1442_vm1, %v1440_v44 }
 0x28c   : > { %v1711_v59 = vpop.permute.xlu0 %1710 }
 0x28d   : > { %1713 = vst.msk [vmem:[%s2924_s10 + $0x8] sm:$0xff] %vm1442_vm1, %v1711_v59 }
 0x294   : > { %v1718_v55 = vld [vmem:[%s3007_s5] sm:$0xff]  ;;  %v1719_v33 = vld [vmem:[%s3007_s5 + $0x8] sm:$0xff]  ;;  %v1720_v21 = vld [vmem:[%s3007_s5 + $0x10] sm:$0xff] }
 0x295   : > { %v1722_v2 = vadd.f32 %v1719_v33, %v1718_v55  ;;  %v1729_v4 = vmul.f32 %v1718_v55, %v1718_v55  ;;  %v1730_v29 = vmul.f32 %v1719_v33, %v1719_v33  ;;  %v1721_v34 = vld [vmem:[%s3007_s5 + $0x18] sm:$0xff]  ;;  %v1731_v19 = vmul.f32 %v1720_v21, %v1720_v21 }
 0x296   : > { %v1732_v9 = vmul.f32 %v1721_v34, %v1721_v34  ;;  %v1725_v14 = vadd.f32 %v1721_v34, %v1720_v21 }
 0x297   : > { %1723 = vadd.xlane.f32.xlu0 %v1722_v2  ;;  %v1733_v51 = vadd.f32 %v1730_v29, %v1729_v4 }
 0x298   : > { %v1736_v37 = vadd.f32 %v1732_v9, %v1731_v19 }
 0x299   : > { %1734 = vadd.xlane.f32.xlu1 %v1733_v51 }
 0x29b   : > { %1726 = vadd.xlane.f32.xlu0 %v1725_v14 }
 0x29d   : > { %1737 = vadd.xlane.f32.xlu1 %v1736_v37 }
 0x324   : > { %v1724_v32 = vpop.xlane.xlu0 %1723 }
 0x326   : > { %v1735_v16 = vpop.xlane.xlu1 %1734 }
 0x328   : > { %v1727_v17 = vpop.xlane.xlu0 %1726 }
 0x329   : > { %v1728_v13 = vadd.f32 %v1727_v17, %v1724_v32 }
 0x32a   : > { %v1738_v22 = vpop.xlane.xlu1 %1737 }
 0x32b   : > { %v1740_v50 = vmul.f32 0.001953125, %v1728_v13  ;;  %v1739_v31 = vadd.f32 %v1738_v22, %v1735_v16 }
 0x32d   : > { %v1742_v15 = vmul.f32 %v1740_v50, %v1740_v50  ;;  %v1741_v52 = vmul.f32 0.001953125, %v1739_v31 }
 0x32f   : > { %v1743_v49 = vsub.f32 %v1741_v52, %v1742_v15 }
 0x331   : > { %v1745_v12 = vadd.f32 0.001, %v1743_v49 }
 0x333   : > { %2063 = vrsqrt.f32 %v1745_v12 }
 0x33d   : > { %v2064_v40 = vpop.eup %2063 }
 0x33e   : > { %v1747_v7 = vmul.f32 %v2064_v40, %v1744_v42 }
 0x340   : > { %1753 = vperm.xlu0 %2061, %v1747_v7   ;;  %v1749_v62 = vmul.f32 %v1747_v7, %v1740_v50 }
 0x342   : > { %v1750_v26 = vsub.f32 %v1748_v46, %v1749_v62 }
 0x344   : > { %1762 = vperm.xlu1 %2062, %v1750_v26  }
 0x3bf   : > { %v1754_v35 = vpop.permute.xlu0 %1753 }
 0x3c0   : > { %v1756_v41 = vmul.f32 %v1754_v35, %v1718_v55  ;;  %v1757_v38 = vmul.f32 %v1754_v35, %v1719_v33  ;;  %v1758_v1 = vmul.f32 %v1754_v35, %v1720_v21  ;;  %v1759_v43 = vmul.f32 %v1754_v35, %v1721_v34 }
 0x3c3   : > { %v1763_v23 = vpop.permute.xlu1 %1762 }
 0x3c4   : > { %v1765_v61 = vadd.f32 %v1763_v23, %v1756_v41  ;;  %v1766_v10 = vadd.f32 %v1763_v23, %v1757_v38  ;;  %v1767_v53 = vadd.f32 %v1763_v23, %v1758_v1  ;;  %v1768_v60 = vadd.f32 %v1763_v23, %v1759_v43 }
 0x3c6   : > { %1769 = vst [vmem:[%s3007_s5] sm:$0xff] %v1765_v61  ;;  %1770 = vst [vmem:[%s3007_s5 + $0x8] sm:$0xff] %v1766_v10 }
 0x3c7   : > { %1771 = vst [vmem:[%s3007_s5 + $0x10] sm:$0xff] %v1767_v53  ;;  %1772 = vst [vmem:[%s3007_s5 + $0x18] sm:$0xff] %v1768_v60 }
 0x3c8 PF: > { %s19_s23 = sadd.s32 1, %s2164_s23   ;;  %s3018_s18 = smov %s2148_s19 }
 0x3c9   : > { %p16_p13 = scmp.ge.s32.totalorder %s19_s23, 4   ;;  %s3019_s19 = smov %s2152_s20 }
 0x3ca   : > { %s3020_s20 = smov %s2293_s17  ;;  %s3021_s21 = smov %s2160_s22 }
 0x3cb   : > { %s3022_s22 = smov %s3024_s7  ;;  %18 = sbr.rel (!%p16_p13) target bundleno = 5 (0x5), region = 106 }
 0x3d2   :  { %1794 = vsyncpa [#allocation5], 1 }
 0x3d3   :  { %1796 = vsyncpa [#allocation5 + $0x1], 1 }
 0x3d4   :  { %1797 = vsyncpa [#allocation6], 1 }
 0x3d5   :  { %1799 = vsyncpa [#allocation6 + $0x1], 1 }

</bundles_post_ra>
